<compile_context>
chip_gen: v6e
topology: v6e:2x2x1
jax: 0.10.0
libtpu: 0.0.40
codegen_flags: <defaults>
</compile_context>

<pallas_src>
import math

import jax
import jax.numpy as jnp
from jax.experimental import pallas as pl
from jax.experimental.pallas import tpu as pltpu

D_IN, D_H0, D_H1, D_OUT, D_OUT_PAD = 768, 1024, 256, 1, 128


def _pick(dim, candidates):
    for c in candidates:
        if dim % c == 0:
            return c
    return dim  # full extent (always legal)


# ----------------------------------------------------------------------------- kernel
def prior_disc_kernel(x_ref, w0_ref, b0_ref, w1_ref, b1_ref, w2_ref, b2_ref, o_ref):
    # layer 0: (tm, 768) @ (768, 1024) + b0, ReLU   (bf16 in, f32 acc)
    h = jnp.dot(x_ref[...], w0_ref[...], preferred_element_type=jnp.float32)
    h = jnp.maximum(h + b0_ref[...], 0.0).astype(jnp.bfloat16)
    # layer 1: (tm, 1024) @ (1024, 256) + b1, ReLU
    h = jnp.dot(h, w1_ref[...], preferred_element_type=jnp.float32)
    h = jnp.maximum(h + b1_ref[...], 0.0).astype(jnp.bfloat16)
    # layer 2: (tm, 256) @ (256, 128) + b2 (output col 0 is the real logit), sigmoid
    z = jnp.dot(h, w2_ref[...], preferred_element_type=jnp.float32) + b2_ref[...]
    o_ref[...] = (1.0 / (1.0 + jnp.exp(-z))).astype(o_ref.dtype)


# ----------------------------------------------------------------------------- wrapper
@jax.jit
def prior_discriminator_forward(params, x):
    """x: (B, 768) float32 -> (B, 1) float32."""
    B = x.shape[0]
    Bp = ((B + 7) // 8) * 8                               # pad batch to sublane multiple
    xp = jnp.zeros((Bp, D_IN), jnp.bfloat16).at[:B, :].set(x.astype(jnp.bfloat16))

    tm = _pick(Bp, (256, 128, 64, 32, 16, 8))
    grid = (Bp // tm,)

    out = pl.pallas_call(
        prior_disc_kernel,
        out_shape=jax.ShapeDtypeStruct((Bp, D_OUT_PAD), jnp.float32),
        grid_spec=pltpu.PrefetchScalarGridSpec(
            num_scalar_prefetch=0,
            grid=grid,
            in_specs=[
                pl.BlockSpec((tm, D_IN), lambda i: (i, 0)),          # x tile
                pl.BlockSpec((D_IN, D_H0), lambda i: (0, 0)),        # w0 (resident)
                pl.BlockSpec((1, D_H0), lambda i: (0, 0)),           # b0
                pl.BlockSpec((D_H0, D_H1), lambda i: (0, 0)),        # w1 (resident)
                pl.BlockSpec((1, D_H1), lambda i: (0, 0)),           # b1
                pl.BlockSpec((D_H1, D_OUT_PAD), lambda i: (0, 0)),   # w2 (padded, resident)
                pl.BlockSpec((1, D_OUT_PAD), lambda i: (0, 0)),      # b2 (padded)
            ],
            out_specs=pl.BlockSpec((tm, D_OUT_PAD), lambda i: (i, 0)),
        ),
        compiler_params=pltpu.CompilerParams(
            dimension_semantics=("parallel",),
            # ~6 MiB working set; 32 MiB limit is safe on v5e/v6e/v7x.
            vmem_limit_bytes=32 * 1024 * 1024,
        ),
    )(xp, params['w0'], params['b0'], params['w1'], params['b1'],
      params['w2p'], params['b2p'])

    return out[:B, :D_OUT]   # drop batch padding + the 127 zero-padded output lanes


# ----------------------------------------------------------------------------- params
def init_params(key):
    """torch nn.Linear default init: U(-1/sqrt(fan_in), 1/sqrt(fan_in)) for W and b.
    Weights stored transposed as (fin, fout); matmul inputs kept in bf16."""
    def linear_wb(k, fin, fout):
        kw, kb = jax.random.split(k)
        bound = 1.0 / math.sqrt(fin)
        w = jax.random.uniform(kw, (fin, fout), jnp.float32, -bound, bound)
        b = jax.random.uniform(kb, (fout,), jnp.float32, -bound, bound)
        return w, b

    k0, k1, k2 = jax.random.split(key, 3)
    w0, b0 = linear_wb(k0, D_IN, D_H0)
    w1, b1 = linear_wb(k1, D_H0, D_H1)
    w2, b2 = linear_wb(k2, D_H1, D_OUT)

    # pad the final layer's output dim 1 -> 128 (zero columns) for lane-dense stores
    w2p = jnp.zeros((D_H1, D_OUT_PAD), jnp.float32).at[:, :D_OUT].set(w2)
    b2p = jnp.zeros((1, D_OUT_PAD), jnp.float32).at[:, :D_OUT].set(b2.reshape(1, D_OUT))

    return {
        'w0': w0.astype(jnp.bfloat16), 'b0': b0.reshape(1, D_H0),
        'w1': w1.astype(jnp.bfloat16), 'b1': b1.reshape(1, D_H1),
        'w2p': w2p.astype(jnp.bfloat16), 'b2p': b2p,
    }


# ----------------------------------------------------------------------------- reference
def reference_forward(params, x):
    """Pure-JAX reference with the same bf16 matmul-input casts."""
    h = jnp.dot(x.astype(jnp.bfloat16), params['w0'],
                preferred_element_type=jnp.float32) + params['b0']
    h = jnp.maximum(h, 0.0).astype(jnp.bfloat16)
    h = jnp.dot(h, params['w1'], preferred_element_type=jnp.float32) + params['b1']
    h = jnp.maximum(h, 0.0).astype(jnp.bfloat16)
    z = jnp.dot(h, params['w2p'], preferred_element_type=jnp.float32) + params['b2p']
    return (1.0 / (1.0 + jnp.exp(-z)))[:, :D_OUT]


# ----------------------------------------------------------------------------- main
if __name__ == "__main__":
    key = jax.random.PRNGKey(0)
    kx, kp = jax.random.split(key)

    B = 2
    x = jax.random.normal(kx, (B, D_IN), jnp.float32)
    params = init_params(kp)

    out = prior_discriminator_forward(params, x)
    jax.block_until_ready(out)

    assert out.shape == (B, D_OUT)
    assert bool(jnp.all(jnp.isfinite(out)))
    assert bool(jnp.all((out >= 0.0) & (out <= 1.0)))

    ref = reference_forward(params, x)
    assert jnp.allclose(out, ref, rtol=2e-2, atol=2e-2), (out, ref)

    # TODO(synk): bf16 matmul inputs deviate from torch's f32 math by ~1e-2 rel;
    # switch weight/activation dtype to f32 if bit-closer parity is required.
    print("KERNEL_OK")
</pallas_src>

<mosaic_0001>
module attributes {stable_mosaic.version = 11 : i64} {
  func.func @prior_disc_kernel(%arg0: i32, %arg1: memref<8x768xbf16, #tpu.memory_space<vmem>>, %arg2: memref<768x1024xbf16, #tpu.memory_space<vmem>>, %arg3: memref<1x1024xf32, #tpu.memory_space<vmem>>, %arg4: memref<1024x256xbf16, #tpu.memory_space<vmem>>, %arg5: memref<1x256xf32, #tpu.memory_space<vmem>>, %arg6: memref<256x128xbf16, #tpu.memory_space<vmem>>, %arg7: memref<1x128xf32, #tpu.memory_space<vmem>>, %arg8: memref<8x128xf32, #tpu.memory_space<vmem>>) attributes {dimension_semantics = [#tpu.dimension_semantics<parallel>], iteration_bounds = array<i64: 1>, scalar_prefetch = 0 : i64, scratch_operands = 0 : i64, tpu.core_type = #tpu.core_type<tc>, window_params = [{transform_indices = @transform_0, window_bounds = array<i64: 8, 768>}, {pipeline_mode = #tpu.pipeline_mode<synchronous>, transform_indices = @transform_1, window_bounds = array<i64: 768, 1024>}, {pipeline_mode = #tpu.pipeline_mode<synchronous>, transform_indices = @transform_2, window_bounds = array<i64: 1, 1024>}, {pipeline_mode = #tpu.pipeline_mode<synchronous>, transform_indices = @transform_3, window_bounds = array<i64: 1024, 256>}, {pipeline_mode = #tpu.pipeline_mode<synchronous>, transform_indices = @transform_4, window_bounds = array<i64: 1, 256>}, {pipeline_mode = #tpu.pipeline_mode<synchronous>, transform_indices = @transform_5, window_bounds = array<i64: 256, 128>}, {pipeline_mode = #tpu.pipeline_mode<synchronous>, transform_indices = @transform_6, window_bounds = array<i64: 1, 128>}, {transform_indices = @transform_7, window_bounds = array<i64: 8, 128>}]} {
    %c0 = arith.constant 0 : index
    %c0_0 = arith.constant 0 : index
    %0 = vector.load %arg1[%c0, %c0_0] : memref<8x768xbf16, #tpu.memory_space<vmem>>, vector<8x768xbf16>
    %c0_1 = arith.constant 0 : index
    %c0_2 = arith.constant 0 : index
    %1 = vector.load %arg2[%c0_1, %c0_2] : memref<768x1024xbf16, #tpu.memory_space<vmem>>, vector<768x1024xbf16>
    %cst = arith.constant dense<0.000000e+00> : vector<8x1024xf32>
    %2 = tpu.matmul %0, %1, %cst {dimension_numbers = #tpu.dot_dimension_numbers<[1], [0], [0], [1], [0, 0, 1, 1], [], []>} : vector<8x768xbf16>, vector<768x1024xbf16>, vector<8x1024xf32> -> vector<8x1024xf32>
    %c0_3 = arith.constant 0 : index
    %c0_4 = arith.constant 0 : index
    %3 = vector.load %arg3[%c0_3, %c0_4] : memref<1x1024xf32, #tpu.memory_space<vmem>>, vector<1x1024xf32>
    %4 = vector.broadcast %3 : vector<1x1024xf32> to vector<8x1024xf32>
    %5 = arith.addf %2, %4 : vector<8x1024xf32>
    %cst_5 = arith.constant 0.000000e+00 : f32
    %6 = vector.broadcast %cst_5 : f32 to vector<8x1024xf32>
    %7 = arith.maximumf %5, %6 : vector<8x1024xf32>
    %8 = arith.truncf %7 : vector<8x1024xf32> to vector<8x1024xbf16>
    %c0_6 = arith.constant 0 : index
    %c0_7 = arith.constant 0 : index
    %9 = vector.load %arg4[%c0_6, %c0_7] : memref<1024x256xbf16, #tpu.memory_space<vmem>>, vector<1024x256xbf16>
    %cst_8 = arith.constant dense<0.000000e+00> : vector<8x256xf32>
    %10 = tpu.matmul %8, %9, %cst_8 {dimension_numbers = #tpu.dot_dimension_numbers<[1], [0], [0], [1], [0, 0, 1, 1], [], []>} : vector<8x1024xbf16>, vector<1024x256xbf16>, vector<8x256xf32> -> vector<8x256xf32>
    %c0_9 = arith.constant 0 : index
    %c0_10 = arith.constant 0 : index
    %11 = vector.load %arg5[%c0_9, %c0_10] : memref<1x256xf32, #tpu.memory_space<vmem>>, vector<1x256xf32>
    %12 = vector.broadcast %11 : vector<1x256xf32> to vector<8x256xf32>
    %13 = arith.addf %10, %12 : vector<8x256xf32>
    %cst_11 = arith.constant 0.000000e+00 : f32
    %14 = vector.broadcast %cst_11 : f32 to vector<8x256xf32>
    %15 = arith.maximumf %13, %14 : vector<8x256xf32>
    %16 = arith.truncf %15 : vector<8x256xf32> to vector<8x256xbf16>
    %c0_12 = arith.constant 0 : index
    %c0_13 = arith.constant 0 : index
    %17 = vector.load %arg6[%c0_12, %c0_13] : memref<256x128xbf16, #tpu.memory_space<vmem>>, vector<256x128xbf16>
    %cst_14 = arith.constant dense<0.000000e+00> : vector<8x128xf32>
    %18 = tpu.matmul %16, %17, %cst_14 {dimension_numbers = #tpu.dot_dimension_numbers<[1], [0], [0], [1], [0, 0, 1, 1], [], []>} : vector<8x256xbf16>, vector<256x128xbf16>, vector<8x128xf32> -> vector<8x128xf32>
    %c0_15 = arith.constant 0 : index
    %c0_16 = arith.constant 0 : index
    %19 = vector.load %arg7[%c0_15, %c0_16] : memref<1x128xf32, #tpu.memory_space<vmem>>, vector<1x128xf32>
    %20 = vector.broadcast %19 : vector<1x128xf32> to vector<8x128xf32>
    %21 = arith.addf %18, %20 : vector<8x128xf32>
    %cst_17 = arith.constant 0.000000e+00 : f32
    %22 = vector.broadcast %cst_17 : f32 to vector<8x128xf32>
    %23 = arith.subf %22, %21 : vector<8x128xf32>
    %24 = math.exp %23 : vector<8x128xf32>
    %cst_18 = arith.constant 1.000000e+00 : f32
    %25 = vector.broadcast %cst_18 : f32 to vector<8x128xf32>
    %26 = arith.addf %25, %24 : vector<8x128xf32>
    %cst_19 = arith.constant 1.000000e+00 : f32
    %27 = vector.broadcast %cst_19 : f32 to vector<8x128xf32>
    %28 = arith.divf %27, %26 : vector<8x128xf32>
    %c0_20 = arith.constant 0 : index
    %c0_21 = arith.constant 0 : index
    %29 = vector.load %arg8[%c0_20, %c0_21] : memref<8x128xf32, #tpu.memory_space<vmem>>, vector<8x128xf32>
    tpu.vector_store %arg8[%c0_20, %c0_21], %28 {strides = array<i32>} : memref<8x128xf32, #tpu.memory_space<vmem>>, vector<8x128xf32>,
    return
  }
  func.func @transform_0(%arg0: i32) -> (i32, i32) {
    %c0_i32 = arith.constant 0 : i32
    %c0_i32_0 = arith.constant 0 : i32
    return %arg0, %c0_i32 : i32, i32
  }
  func.func @transform_1(%arg0: i32) -> (i32, i32) {
    %c0_i32 = arith.constant 0 : i32
    %c0_i32_0 = arith.constant 0 : i32
    %c0_i32_1 = arith.constant 0 : i32
    return %c0_i32, %c0_i32_0 : i32, i32
  }
  func.func @transform_2(%arg0: i32) -> (i32, i32) {
    %c0_i32 = arith.constant 0 : i32
    %c0_i32_0 = arith.constant 0 : i32
    %c0_i32_1 = arith.constant 0 : i32
    return %c0_i32, %c0_i32_0 : i32, i32
  }
  func.func @transform_3(%arg0: i32) -> (i32, i32) {
    %c0_i32 = arith.constant 0 : i32
    %c0_i32_0 = arith.constant 0 : i32
    %c0_i32_1 = arith.constant 0 : i32
    return %c0_i32, %c0_i32_0 : i32, i32
  }
  func.func @transform_4(%arg0: i32) -> (i32, i32) {
    %c0_i32 = arith.constant 0 : i32
    %c0_i32_0 = arith.constant 0 : i32
    %c0_i32_1 = arith.constant 0 : i32
    return %c0_i32, %c0_i32_0 : i32, i32
  }
  func.func @transform_5(%arg0: i32) -> (i32, i32) {
    %c0_i32 = arith.constant 0 : i32
    %c0_i32_0 = arith.constant 0 : i32
    %c0_i32_1 = arith.constant 0 : i32
    return %c0_i32, %c0_i32_0 : i32, i32
  }
  func.func @transform_6(%arg0: i32) -> (i32, i32) {
    %c0_i32 = arith.constant 0 : i32
    %c0_i32_0 = arith.constant 0 : i32
    %c0_i32_1 = arith.constant 0 : i32
    return %c0_i32, %c0_i32_0 : i32, i32
  }
  func.func @transform_7(%arg0: i32) -> (i32, i32) {
    %c0_i32 = arith.constant 0 : i32
    %c0_i32_0 = arith.constant 0 : i32
    return %arg0, %c0_i32 : i32, i32
  }
}

</mosaic_0001>

<bundles_post_ra>
// kernel: prior_discriminator_forward.1
= control target key start
LH: loop header
LB: loop body
LE: loop exit
PB: predicated region body
PF: predicated region fallthrough
CT: control target
= control target key end

     0   :  { %12 = vsyncpa [#allocation3], 0  ;;  %s5237_s0 = inlined_call_operand.vmem [shape: bf16[8,768], index: 0, kind: input, shape index: {}]   ;;  %s5238_s1 = inlined_call_operand.hbm [shape: bf16[768,1024], index: 1, kind: input, shape index: {}]   ;;  %s5239_s2 = inlined_call_operand.hbm [shape: f32[1,1024], index: 2, kind: input, shape index: {}]   ;;  %s5240_s3 = inlined_call_operand.hbm [shape: bf16[1024,256], index: 3, kind: input, shape index: {}]   ;;  %s5241_s4 = inlined_call_operand.hbm [shape: f32[1,256], index: 4, kind: input, shape index: {}]   ;;  %s5242_s5 = inlined_call_operand.hbm [shape: bf16[256,128], index: 5, kind: input, shape index: {}]   ;;  %s5243_s6 = inlined_call_operand.hbm [shape: f32[1,128], index: 6, kind: input, shape index: {}]   ;;  %s5244_s7 = inlined_call_operand.vmem [shape: f32[8,128], index: 7, kind: output, shape index: {}]  }
   0x1   :  { %13 = vsyncpa [#allocation5], 0 }
   0x2   :  { %14 = vsyncpa [#allocation8], 0 }
   0x3   :  { %15 = vsyncpa [#allocation11], 0  ;;  %s5035_s24 = smov [#allocation4]   ;;  %s5036_s26 = smov [#allocation7]  }
   0x4   :  { %s36_s25 = sshll.u32 %s5035_s24, 4  ;;  %s58_s27 = sshll.u32 %s5036_s26, 4  ;;  %s37_s25 = int_to_ptr.vmem [resolvable:$true] %s36_s25  ;;  %s59_s27 = int_to_ptr.vmem [resolvable:$true] %s58_s27 }
   0x5   :  { %s4915_s28 = scalar_lea.vmem %s37_s25, 128  ;;  %p4920_p1 = scmp.lt.s32.totalorder %s37_s25, %s37_s25 }
   0x6   :  { %p4916_p0 = scmp.ne.s32.totalorder %s37_s25, %s4915_s28  ;;  %p4921_p2 = scmp.lt.s32.totalorder %s4915_s28, %s4915_s28 }
   0x8   :  { %p4922_p3 = por %p4921_p2, %p4920_p1 }
   0xa   :  { %p4923_p4 = pnand %p4922_p3, %p4916_p0 }
   0xc   :  { %4926 = shalt.err (!%p4923_p4)
}
   0xd   :  { %39 = dma.hbm_to_vmem [thread:$0]  %s5239_s2, 128, %s37_s25, [#allocation5]  }
   0xe   :  { %s4935_s8 = scalar_lea.vmem %s59_s27, 32  ;;  %p4940_p6 = scmp.lt.s32.totalorder %s59_s27, %s59_s27 }
   0xf   :  { %p4936_p5 = scmp.ne.s32.totalorder %s59_s27, %s4935_s8  ;;  %p4941_p7 = scmp.lt.s32.totalorder %s4935_s8, %s4935_s8 }
  0x11   :  { %p4942_p8 = por %p4941_p7, %p4940_p6 }
  0x13   :  { %p4943_p9 = pnand %p4942_p8, %p4936_p5 }
  0x15   :  { %4946 = shalt.err (!%p4943_p9)
}
  0x16   :  { %61 = dma.hbm_to_vmem [thread:$0]  %s5241_s4, 32, %s59_s27, [#allocation8]  }
  0x17   :  { %s5037_s11 = smov [#allocation2]  }
  0x18   :  { %s23_s12 = sshll.u32 %s5037_s11, 4  ;;  %s24_s12 = int_to_ptr.vmem [resolvable:$true] %s23_s12 }
  0x19   :  { %s4955_s13 = scalar_lea.vmem %s24_s12, 49152  ;;  %p4960_p11 = scmp.lt.s32.totalorder %s24_s12, %s24_s12 }
  0x1a   :  { %p4956_p10 = scmp.ne.s32.totalorder %s24_s12, %s4955_s13  ;;  %p4961_p12 = scmp.lt.s32.totalorder %s4955_s13, %s4955_s13 }
  0x1c   :  { %p4962_p13 = por %p4961_p12, %p4960_p11 }
  0x1e   :  { %p4963_p0 = pnand %p4962_p13, %p4956_p10 }
  0x20   :  { %4966 = shalt.err (!%p4963_p0)
}
  0x21   :  { %s5038_s2 = smov 512   ;;  %s5039_s14 = smov 32  }
  0x22   :  { %29 = dma.hbm_to_vmem [thread:$0]  %s5238_s1, 49152, %s24_s12, [#allocation3], %s5038_s2, %s5038_s2, %s5039_s14  }
  0x23   :  { %s5040_s17 = smov [#allocation6]  }
  0x24   :  { %s45_s18 = sshll.u32 %s5040_s17, 4  ;;  %s46_s18 = int_to_ptr.vmem [resolvable:$true] %s45_s18 }
  0x25   :  { %s4975_s4 = scalar_lea.vmem %s46_s18, 16384  ;;  %p4980_p2 = scmp.lt.s32.totalorder %s46_s18, %s46_s18 }
  0x26   :  { %p4976_p1 = scmp.ne.s32.totalorder %s46_s18, %s4975_s4  ;;  %p4981_p3 = scmp.lt.s32.totalorder %s4975_s4, %s4975_s4 }
  0x28   :  { %p4982_p4 = por %p4981_p3, %p4980_p2 }
  0x2a   :  { %p4983_p5 = pnand %p4982_p4, %p4976_p1 }
  0x2c   :  { %4986 = shalt.err (!%p4983_p5)
}
  0x2d   :  { %s5041_s19 = smov 128   ;;  %s5042_s20 = smov 8  }
  0x2e   :  { %51 = dma.hbm_to_vmem [thread:$0]  %s5240_s3, 16384, %s46_s18, [#allocation5], %s5041_s19, %s5041_s19, %s5042_s20  }
  0x2f   :  { %s5043_s23 = smov [#allocation9]  }
  0x30   :  { %s67_s24 = sshll.u32 %s5043_s23, 4  ;;  %s68_s24 = int_to_ptr.vmem [resolvable:$true] %s67_s24 }
  0x31   :  { %s4995_s1 = scalar_lea.vmem %s68_s24, 2048  ;;  %p5000_p7 = scmp.lt.s32.totalorder %s68_s24, %s68_s24 }
  0x32   :  { %p4996_p6 = scmp.ne.s32.totalorder %s68_s24, %s4995_s1  ;;  %p5001_p8 = scmp.lt.s32.totalorder %s4995_s1, %s4995_s1 }
  0x34   :  { %p5002_p9 = por %p5001_p8, %p5000_p7 }
  0x36   :  { %p5003_p10 = pnand %p5002_p9, %p4996_p6 }
  0x38   :  { %5006 = shalt.err (!%p5003_p10)
}
  0x39   :  { %s5044_s25 = smov 64   ;;  %s5045_s26 = smov 4  }
  0x3a   :  { %73 = dma.hbm_to_vmem [thread:$0]  %s5242_s5, 2048, %s68_s24, [#allocation8], %s5044_s25, %s5044_s25, %s5045_s26  }
  0x3b   :  { %s5046_s29 = smov [#allocation10]  }
  0x3c   :  { %s80_s30 = sshll.u32 %s5046_s29, 4  ;;  %s81_s30 = int_to_ptr.vmem [resolvable:$true] %s80_s30 }
  0x3d   :  { %s5015_s3 = scalar_lea.vmem %s81_s30, 16  ;;  %s5019_s8 = scalar_lea.vmem %s81_s30, 32 }
  0x3e   :  { %p5016_p11 = scmp.ne.s32.totalorder %s81_s30, %s5015_s3  ;;  %p5020_p12 = scmp.lt.s32.totalorder %s81_s30, %s81_s30 }
  0x3f   :  { %p5021_p13 = scmp.lt.s32.totalorder %s5019_s8, %s5015_s3 }
  0x41   :  { %p5022_p0 = por %p5021_p13, %p5020_p12 }
  0x43   :  { %p5023_p1 = pnand %p5022_p0, %p5016_p11 }
  0x45   :  { %5026 = shalt.err (!%p5023_p1)
}
  0x46   :  { %83 = dma.hbm_to_vmem [thread:$0]  %s5243_s6, 16, %s81_s30, [#allocation11]  }
  0x47   :  { %5027 = dma.done.wait [#allocation3], 49152  }
  0x48   :  { %5028 = vsyncadd [#allocation3], 4294918144 }
  0x49   :  { %5029 = dma.done.wait [#allocation5], 16512  }
  0x4a   :  { %5030 = vsyncadd [#allocation5], 4294950784 }
  0x4b   :  { %5031 = dma.done.wait [#allocation8], 2080  }
  0x4c   :  { %5032 = vsyncadd [#allocation8], 4294965216 }
  0x4d   :  { %5033 = dma.done.wait [#allocation11], 16  }
  0x4e   :  { %5034 = vsyncadd [#allocation11], 4294967280  ;;  %v162_v0 = vld [vmem:[#allocation2 + $0x1c0] sm:$0xff]  ;;  %v5113_v54 = vld [vmem:[%s5237_s0 + $0x8] sm:$0xff] }
  0x4f   :  { %v166_v1 = vld [vmem:[#allocation2 + $0x1e0] sm:$0xff]  ;;  %v5121_v59 = vcombine.high %v5113_v54, %v5113_v54 }
  0x50   :  { %v290_v2 = vld [vmem:[#allocation2 + $0x5c0] sm:$0xff]  ;;  %v4182_v3 = vcombine.high %v162_v0, %v166_v1  ;;  %v4181_v5 = vcombine.low %v162_v0, %v166_v1 }
  0x51   :  { %v294_v4 = vld [vmem:[#allocation2 + $0x5e0] sm:$0xff]  ;;  %2546 = vmatprep.mubr.bf16.mxu1 %v5121_v59 }
  0x52   :  { %v154_v6 = vld [vmem:[#allocation2 + $0x180] sm:$0xff]  ;;  %v4310_v8 = vcombine.high %v290_v2, %v294_v4  ;;  %v4309_v9 = vcombine.low %v290_v2, %v294_v4  ;;  %2473 = vmatprep.subr.bf16.mxu0 %v4182_v3 }
  0x53   :  { %v158_v7 = vld [vmem:[#allocation2 + $0x1a0] sm:$0xff]  ;;  %2474 = vmatpush1.bf16.msra.mxu0 %v4181_v5 }
  0x54   :  { %v4174_v10 = vcombine.high %v154_v6, %v158_v7  ;;  %v282_v11 = vld [vmem:[#allocation2 + $0x580] sm:$0xff]  ;;  %2514 = vmatprep.subr.bf16.mxu1 %v4310_v8  ;;  %v4173_v18 = vcombine.low %v154_v6, %v158_v7 }
  0x55   :  { %v286_v12 = vld [vmem:[#allocation2 + $0x5a0] sm:$0xff]  ;;  %2515 = vmatpush1.bf16.msra.mxu1 %v4309_v9 }
  0x56   :  { %v146_v13 = vld [vmem:[#allocation2 + $0x140] sm:$0xff]  ;;  %v4302_v14 = vcombine.high %v282_v11, %v286_v12  ;;  %2475 = vmatprep.subr.bf16.mxu0 %v4174_v10  ;;  %v4301_v19 = vcombine.low %v282_v11, %v286_v12 }
  0x57   :  { %v150_v15 = vld [vmem:[#allocation2 + $0x160] sm:$0xff]  ;;  %2476 = vmatpush1.bf16.msra.mxu0 %v4173_v18 }
  0x58   :  { %v274_v16 = vld [vmem:[#allocation2 + $0x540] sm:$0xff]  ;;  %v4166_v20 = vcombine.high %v146_v13, %v150_v15  ;;  %2516 = vmatprep.subr.bf16.mxu1 %v4302_v14  ;;  %v4165_v26 = vcombine.low %v146_v13, %v150_v15 }
  0x59   :  { %v278_v17 = vld [vmem:[#allocation2 + $0x560] sm:$0xff]  ;;  %2517 = vmatpush1.bf16.msra.mxu1 %v4301_v19 }
  0x5a   :  { %v4294_v21 = vcombine.high %v274_v16, %v278_v17  ;;  %v138_v22 = vld [vmem:[#allocation2 + $0x100] sm:$0xff]  ;;  %2477 = vmatprep.subr.bf16.mxu0 %v4166_v20  ;;  %v4293_v27 = vcombine.low %v274_v16, %v278_v17 }
  0x5b   :  { %v142_v23 = vld [vmem:[#allocation2 + $0x120] sm:$0xff]  ;;  %2478 = vmatpush1.bf16.msra.mxu0 %v4165_v26 }
  0x5c   :  { %v266_v24 = vld [vmem:[#allocation2 + $0x500] sm:$0xff]  ;;  %v4158_v28 = vcombine.high %v138_v22, %v142_v23  ;;  %2518 = vmatprep.subr.bf16.mxu1 %v4294_v21  ;;  %v4157_v34 = vcombine.low %v138_v22, %v142_v23 }
  0x5d   :  { %v270_v25 = vld [vmem:[#allocation2 + $0x520] sm:$0xff]  ;;  %2519 = vmatpush1.bf16.msra.mxu1 %v4293_v27 }
  0x5e   :  { %v4286_v29 = vcombine.high %v266_v24, %v270_v25  ;;  %v130_v30 = vld [vmem:[#allocation2 + $0xc0] sm:$0xff]  ;;  %2479 = vmatprep.subr.bf16.mxu0 %v4158_v28  ;;  %v4285_v35 = vcombine.low %v266_v24, %v270_v25 }
  0x5f   :  { %v134_v31 = vld [vmem:[#allocation2 + $0xe0] sm:$0xff]  ;;  %2480 = vmatpush1.bf16.msra.mxu0 %v4157_v34 }
  0x60   :  { %v258_v32 = vld [vmem:[#allocation2 + $0x4c0] sm:$0xff]  ;;  %v4150_v36 = vcombine.high %v130_v30, %v134_v31  ;;  %2520 = vmatprep.subr.bf16.mxu1 %v4286_v29  ;;  %v4149_v42 = vcombine.low %v130_v30, %v134_v31 }
  0x61   :  { %v262_v33 = vld [vmem:[#allocation2 + $0x4e0] sm:$0xff]  ;;  %2521 = vmatpush1.bf16.msra.mxu1 %v4285_v35 }
  0x62   :  { %v4278_v37 = vcombine.high %v258_v32, %v262_v33  ;;  %v122_v38 = vld [vmem:[#allocation2 + $0x80] sm:$0xff]  ;;  %2481 = vmatprep.subr.bf16.mxu0 %v4150_v36  ;;  %v4277_v43 = vcombine.low %v258_v32, %v262_v33 }
  0x63   :  { %v126_v39 = vld [vmem:[#allocation2 + $0xa0] sm:$0xff]  ;;  %2482 = vmatpush1.bf16.msra.mxu0 %v4149_v42 }
  0x64   :  { %v250_v40 = vld [vmem:[#allocation2 + $0x480] sm:$0xff]  ;;  %v4142_v44 = vcombine.high %v122_v38, %v126_v39  ;;  %2522 = vmatprep.subr.bf16.mxu1 %v4278_v37  ;;  %v4141_v50 = vcombine.low %v122_v38, %v126_v39 }
  0x65   :  { %v254_v41 = vld [vmem:[#allocation2 + $0x4a0] sm:$0xff]  ;;  %2523 = vmatpush1.bf16.msra.mxu1 %v4277_v43 }
  0x66   :  { %v4270_v45 = vcombine.high %v250_v40, %v254_v41  ;;  %v114_v46 = vld [vmem:[#allocation2 + $0x40] sm:$0xff]  ;;  %2483 = vmatprep.subr.bf16.mxu0 %v4142_v44  ;;  %v4269_v51 = vcombine.low %v250_v40, %v254_v41 }
  0x67   :  { %v118_v47 = vld [vmem:[#allocation2 + $0x60] sm:$0xff]  ;;  %2484 = vmatpush1.bf16.msra.mxu0 %v4141_v50 }
  0x68   :  { %v242_v48 = vld [vmem:[#allocation2 + $0x440] sm:$0xff]  ;;  %v4134_v52 = vcombine.high %v114_v46, %v118_v47  ;;  %2524 = vmatprep.subr.bf16.mxu1 %v4270_v45  ;;  %v4133_v62 = vcombine.low %v114_v46, %v118_v47 }
  0x69   :  { %v246_v49 = vld [vmem:[#allocation2 + $0x460] sm:$0xff]  ;;  %2525 = vmatpush1.bf16.msra.mxu1 %v4269_v51 }
  0x6a   :  { %v5108_v53 = vld [vmem:[%s5237_s0] sm:$0xff]  ;;  %v4262_v55 = vcombine.high %v242_v48, %v246_v49  ;;  %2485 = vmatprep.subr.bf16.mxu0 %v4134_v52  ;;  %v4261_v63 = vcombine.low %v242_v48, %v246_v49 }
  0x6b   :  { %v106_v56 = vld [vmem:[#allocation2] sm:$0xff]  ;;  %v5117_v58 = vcombine.high %v5108_v53, %v5108_v53  ;;  %2486 = vmatpush1.bf16.msra.mxu0 %v4133_v62 }
  0x6c   :  { %v110_v57 = vld [vmem:[#allocation2 + $0x20] sm:$0xff]  ;;  %2526 = vmatprep.subr.bf16.mxu1 %v4262_v55 }
  0x6d   :  { %v234_v60 = vld [vmem:[#allocation2 + $0x400] sm:$0xff]  ;;  %2505 = vmatprep.mubr.bf16.mxu0 %v5117_v58  ;;  %v4126_v0 = vcombine.high %v106_v56, %v110_v57  ;;  %v4125_v6 = vcombine.low %v106_v56, %v110_v57  ;;  %2527 = vmatpush1.bf16.msra.mxu1 %v4261_v63 }
  0x6e   :  { %v238_v61 = vld [vmem:[#allocation2 + $0x420] sm:$0xff] }
  0x6f   :  { %v4254_v1 = vcombine.high %v234_v60, %v238_v61  ;;  %v226_v2 = vld [vmem:[#allocation2 + $0x3c0] sm:$0xff]  ;;  %2487 = vmatprep.subr.bf16.mxu0 %v4126_v0  ;;  %v4253_v7 = vcombine.low %v234_v60, %v238_v61 }
  0x70   :  { %v230_v3 = vld [vmem:[#allocation2 + $0x3e0] sm:$0xff]  ;;  %2488 = vmatpush1.bf16.msra.mxu0 %v4125_v6 }
  0x71   :  { %v354_v4 = vld [vmem:[#allocation2 + $0x7c0] sm:$0xff]  ;;  %v4246_v8 = vcombine.high %v226_v2, %v230_v3  ;;  %2528 = vmatprep.subr.bf16.mxu1 %v4254_v1  ;;  %v4245_v14 = vcombine.low %v226_v2, %v230_v3 }
  0x72   :  { %v358_v5 = vld [vmem:[#allocation2 + $0x7e0] sm:$0xff]  ;;  %2529 = vmatpush1.bf16.msra.mxu1 %v4253_v7 }
  0x73   :  { %v4374_v9 = vcombine.high %v354_v4, %v358_v5  ;;  %v218_v10 = vld [vmem:[#allocation2 + $0x380] sm:$0xff]  ;;  %2489 = vmatprep.subr.bf16.mxu0 %v4246_v8  ;;  %v4373_v15 = vcombine.low %v354_v4, %v358_v5  ;;  %v163_v8 = vld [vmem:[#allocation2 + $0x1c8] sm:$0xff] }
  0x74   :  { %v222_v11 = vld [vmem:[#allocation2 + $0x3a0] sm:$0xff]  ;;  %2490 = vmatpush2.bf16.msra.mxu0 %v4245_v14 }
  0x75   :  { %v346_v12 = vld [vmem:[#allocation2 + $0x780] sm:$0xff]  ;;  %v4238_v16 = vcombine.high %v218_v10, %v222_v11  ;;  %2530 = vmatprep.subr.bf16.mxu1 %v4374_v9  ;;  %v4237_v22 = vcombine.low %v218_v10, %v222_v11  ;;  %v167_v9 = vld [vmem:[#allocation2 + $0x1e8] sm:$0xff] }
  0x76   :  { %v350_v13 = vld [vmem:[#allocation2 + $0x7a0] sm:$0xff]  ;;  %2531 = vmatpush2.bf16.msra.mxu1 %v4373_v15 }
  0x77   :  { %v4366_v17 = vcombine.high %v346_v12, %v350_v13  ;;  %v210_v18 = vld [vmem:[#allocation2 + $0x340] sm:$0xff]  ;;  %2491 = vmatprep.subr.bf16.mxu0 %v4238_v16  ;;  %v4365_v23 = vcombine.low %v346_v12, %v350_v13  ;;  %v4184_v13 = vcombine.high %v163_v8, %v167_v9  ;;  %v5127_v16 = vcombine.low %v5108_v53, %v5108_v53 }
  0x78   :  { %v214_v19 = vld [vmem:[#allocation2 + $0x360] sm:$0xff]  ;;  %2492 = vmatpush2.bf16.msra.mxu0 %v4237_v22  ;;  %v4183_v22 = vcombine.low %v163_v8, %v167_v9 }
  0x79   :  { %v338_v20 = vld [vmem:[#allocation2 + $0x740] sm:$0xff]  ;;  %v4230_v24 = vcombine.high %v210_v18, %v214_v19  ;;  %2532 = vmatprep.subr.bf16.mxu1 %v4366_v17  ;;  %v4229_v30 = vcombine.low %v210_v18, %v214_v19  ;;  %v155_v17 = vld [vmem:[#allocation2 + $0x188] sm:$0xff]  ;;  %v5132_v19 = vld [vmem:[%s5237_s0 + $0x10] sm:$0xff] }
  0x7a   :  { %v342_v21 = vld [vmem:[#allocation2 + $0x760] sm:$0xff]  ;;  %2533 = vmatpush2.bf16.msra.mxu1 %v4365_v23  ;;  %v159_v18 = vld [vmem:[#allocation2 + $0x1a8] sm:$0xff] }
  0x7b   :  { %v4358_v25 = vcombine.high %v338_v20, %v342_v21  ;;  %v202_v26 = vld [vmem:[#allocation2 + $0x300] sm:$0xff]  ;;  %2493 = vmatprep.subr.bf16.mxu0 %v4230_v24  ;;  %v4357_v31 = vcombine.low %v338_v20, %v342_v21  ;;  %v5136_v20 = vcombine.low %v5113_v54, %v5113_v54 }
  0x7c   :  { %v206_v27 = vld [vmem:[#allocation2 + $0x320] sm:$0xff]  ;;  %2494 = vmatpush2.bf16.msra.mxu0 %v4229_v30 }
  0x7d   :  { %v330_v28 = vld [vmem:[#allocation2 + $0x700] sm:$0xff]  ;;  %v4222_v32 = vcombine.high %v202_v26, %v206_v27  ;;  %2534 = vmatprep.subr.bf16.mxu1 %v4358_v25  ;;  %v4221_v38 = vcombine.low %v202_v26, %v206_v27  ;;  %v147_v25 = vld [vmem:[#allocation2 + $0x148] sm:$0xff]  ;;  %v4176_v26 = vcombine.high %v155_v17, %v159_v18 }
  0x7e   :  { %v334_v29 = vld [vmem:[#allocation2 + $0x720] sm:$0xff]  ;;  %2535 = vmatpush2.bf16.msra.mxu1 %v4357_v31  ;;  %v151_v27 = vld [vmem:[#allocation2 + $0x168] sm:$0xff] }
  0x7f   :  { %v4350_v33 = vcombine.high %v330_v28, %v334_v29  ;;  %v194_v34 = vld [vmem:[#allocation2 + $0x2c0] sm:$0xff]  ;;  %2495 = vmatprep.subr.bf16.mxu0 %v4222_v32  ;;  %v4349_v39 = vcombine.low %v330_v28, %v334_v29  ;;  %v5140_v28 = vcombine.high %v5132_v19, %v5132_v19  ;;  %v4175_v29 = vcombine.low %v155_v17, %v159_v18 }
  0x80   :  { %v198_v35 = vld [vmem:[#allocation2 + $0x2e0] sm:$0xff]  ;;  %2496 = vmatpush2.bf16.msra.mxu0 %v4221_v38 }
  0x81   :  { %v322_v36 = vld [vmem:[#allocation2 + $0x6c0] sm:$0xff]  ;;  %v4214_v40 = vcombine.high %v194_v34, %v198_v35  ;;  %2536 = vmatprep.subr.bf16.mxu1 %v4350_v33  ;;  %v4213_v46 = vcombine.low %v194_v34, %v198_v35  ;;  %v139_v33 = vld [vmem:[#allocation2 + $0x108] sm:$0xff]  ;;  %v4168_v34 = vcombine.high %v147_v25, %v151_v27 }
  0x82   :  { %v326_v37 = vld [vmem:[#allocation2 + $0x6e0] sm:$0xff]  ;;  %2537 = vmatpush2.bf16.msra.mxu1 %v4349_v39  ;;  %v143_v35 = vld [vmem:[#allocation2 + $0x128] sm:$0xff] }
  0x83   :  { %v4342_v41 = vcombine.high %v322_v36, %v326_v37  ;;  %v186_v42 = vld [vmem:[#allocation2 + $0x280] sm:$0xff]  ;;  %2497 = vmatprep.subr.bf16.mxu0 %v4214_v40  ;;  %v4341_v47 = vcombine.low %v322_v36, %v326_v37  ;;  %v4167_v37 = vcombine.low %v147_v25, %v151_v27  ;;  %v223_v25 = vld [vmem:[#allocation2 + $0x3a8] sm:$0xff] }
  0x84   :  { %v190_v43 = vld [vmem:[#allocation2 + $0x2a0] sm:$0xff]  ;;  %2498 = vmatpush2.bf16.msra.mxu0 %v4213_v46 }
  0x85   :  { %v314_v44 = vld [vmem:[#allocation2 + $0x680] sm:$0xff]  ;;  %v4206_v48 = vcombine.high %v186_v42, %v190_v43  ;;  %2538 = vmatprep.subr.bf16.mxu1 %v4342_v41  ;;  %v4205_v56 = vcombine.low %v186_v42, %v190_v43  ;;  %v131_v41 = vld [vmem:[#allocation2 + $0xc8] sm:$0xff]  ;;  %v4160_v42 = vcombine.high %v139_v33, %v143_v35 }
  0x86   :  { %v318_v45 = vld [vmem:[#allocation2 + $0x6a0] sm:$0xff]  ;;  %2539 = vmatpush2.bf16.msra.mxu1 %v4341_v47  ;;  %v135_v43 = vld [vmem:[#allocation2 + $0xe8] sm:$0xff] }
  0x87   :  { %v4334_v49 = vcombine.high %v314_v44, %v318_v45  ;;  %v178_v50 = vld [vmem:[#allocation2 + $0x240] sm:$0xff]  ;;  %2499 = vmatprep.subr.bf16.mxu0 %v4206_v48  ;;  %v4333_v57 = vcombine.low %v314_v44, %v318_v45  ;;  %v4159_v45 = vcombine.low %v139_v33, %v143_v35  ;;  %v215_v33 = vld [vmem:[#allocation2 + $0x368] sm:$0xff] }
  0x88   :  { %v182_v51 = vld [vmem:[#allocation2 + $0x260] sm:$0xff]  ;;  %2500 = vmatpush2.bf16.msra.mxu0 %v4205_v56 }
  0x89   :  { %v306_v52 = vld [vmem:[#allocation2 + $0x640] sm:$0xff]  ;;  %v4198_v60 = vcombine.high %v178_v50, %v182_v51  ;;  %2540 = vmatprep.subr.bf16.mxu1 %v4334_v49  ;;  %v4197_v2 = vcombine.low %v178_v50, %v182_v51  ;;  %v123_v49 = vld [vmem:[#allocation2 + $0x88] sm:$0xff]  ;;  %v4152_v50 = vcombine.high %v131_v41, %v135_v43 }
  0x8a   :  { %v310_v55 = vld [vmem:[#allocation2 + $0x660] sm:$0xff]  ;;  %2541 = vmatpush2.bf16.msra.mxu1 %v4333_v57  ;;  %v127_v51 = vld [vmem:[#allocation2 + $0xa8] sm:$0xff] }
  0x8b   :  { %v4326_v61 = vcombine.high %v306_v52, %v310_v55  ;;  %v170_v62 = vld [vmem:[#allocation2 + $0x200] sm:$0xff]  ;;  %2501 = vmatprep.subr.bf16.mxu0 %v4198_v60  ;;  %v4325_v3 = vcombine.low %v306_v52, %v310_v55  ;;  %v4151_v55 = vcombine.low %v131_v41, %v135_v43  ;;  %v207_v41 = vld [vmem:[#allocation2 + $0x328] sm:$0xff] }
  0x8c   :  { %v174_v63 = vld [vmem:[#allocation2 + $0x220] sm:$0xff]  ;;  %2502 = vmatpush2.bf16.msra.mxu0 %v4197_v2 }
  0x8d   :  { %v298_v0 = vld [vmem:[#allocation2 + $0x600] sm:$0xff]  ;;  %v4190_v4 = vcombine.high %v170_v62, %v174_v63  ;;  %2542 = vmatprep.subr.bf16.mxu1 %v4326_v61  ;;  %v4189_v10 = vcombine.low %v170_v62, %v174_v63  ;;  %v115_v61 = vld [vmem:[#allocation2 + $0x48] sm:$0xff]  ;;  %v4144_v62 = vcombine.high %v123_v49, %v127_v51 }
  0x8e   :  { %v302_v1 = vld [vmem:[#allocation2 + $0x620] sm:$0xff]  ;;  %2543 = vmatpush2.bf16.msra.mxu1 %v4325_v3  ;;  %v119_v63 = vld [vmem:[#allocation2 + $0x68] sm:$0xff] }
  0x8f   :  { %v4318_v5 = vcombine.high %v298_v0, %v302_v1  ;;  %v418_v6 = vld [vmem:[#allocation2 + $0x9c0] sm:$0xff]  ;;  %2503 = vmatprep.subr.bf16.mxu0 %v4190_v4  ;;  %v4317_v11 = vcombine.low %v298_v0, %v302_v1  ;;  %v4143_v1 = vcombine.low %v123_v49, %v127_v51  ;;  %v4135_v9 = vcombine.low %v115_v61, %v119_v63  ;;  %v199_v49 = vld [vmem:[#allocation2 + $0x2e8] sm:$0xff] }
  0x90   :  { %v422_v7 = vld [vmem:[#allocation2 + $0x9e0] sm:$0xff]  ;;  %2504 = vmatpush2.bf16.msra.mxu0 %v4189_v10 }
  0x91   :  { %v4438_v12 = vcombine.high %v418_v6, %v422_v7  ;;  %2544 = vmatprep.subr.bf16.mxu1 %v4318_v5  ;;  %v410_v14 = vld [vmem:[#allocation2 + $0x980] sm:$0xff]  ;;  %v4437_v21 = vcombine.low %v418_v6, %v422_v7  ;;  %v107_v5 = vld [vmem:[#allocation2 + $0x8] sm:$0xff]  ;;  %v4136_v6 = vcombine.high %v115_v61, %v119_v63 }
  0x92   :  { %v414_v15 = vld [vmem:[#allocation2 + $0x9a0] sm:$0xff]  ;;  %2545 = vmatpush2.bf16.msra.mxu1 %v4317_v11  ;;  %v111_v7 = vld [vmem:[#allocation2 + $0x28] sm:$0xff] }
  0x93   :  { %2555 = vmatprep.subr.bf16.mxu0 %v4438_v12  ;;  %v4430_v23 = vcombine.high %v410_v14, %v414_v15  ;;  %v402_v24 = vld [vmem:[#allocation2 + $0x940] sm:$0xff]  ;;  %2596 = vmatprep.subr.bf16.mxu1 %v4184_v13  ;;  %v4429_v54 = vcombine.low %v410_v14, %v414_v15  ;;  %v227_v13 = vld [vmem:[#allocation2 + $0x3c8] sm:$0xff]  ;;  %v4128_v14 = vcombine.high %v107_v5, %v111_v7 }
  0x94   :  { %v406_v53 = vld [vmem:[#allocation2 + $0x960] sm:$0xff]  ;;  %2506 = vmatmul.mubr.bf16.vlgmr.msra.gmra.mxu0 %v5127_v16  ;;  %v231_v15 = vld [vmem:[#allocation2 + $0x3e8] sm:$0xff]  ;;  %v4127_v18 = vcombine.low %v107_v5, %v111_v7 }
  0x95   :  { %2547 = vmatmul.mubr.bf16.vlgmr.msra.gmra.mxu1 %v5136_v20  ;;  %2556 = vmatpush1.bf16.msra.mxu0 %v4437_v21  ;;  %v4422_v30 = vcombine.high %v402_v24, %v406_v53  ;;  %v394_v31 = vld [vmem:[#allocation2 + $0x900] sm:$0xff]  ;;  %v4421_v36 = vcombine.low %v402_v24, %v406_v53  ;;  %v219_v24 = vld [vmem:[#allocation2 + $0x388] sm:$0xff]  ;;  %v4248_v53 = vcombine.high %v227_v13, %v231_v15 }
  0x96   :  { %2597 = vmatpush1.bf16.msra.mxu1 %v4183_v22  ;;  %2557 = vmatprep.subr.bf16.mxu0 %v4430_v23  ;;  %v398_v32 = vld [vmem:[#allocation2 + $0x920] sm:$0xff]  ;;  %v4247_v27 = vcombine.low %v227_v13, %v231_v15  ;;  %v4239_v35 = vcombine.low %v219_v24, %v223_v25  ;;  %v191_v61 = vld [vmem:[#allocation2 + $0x2a8] sm:$0xff] }
  0x97   :  { %2598 = vmatprep.subr.bf16.mxu1 %v4176_v26  ;;  %2587 = vmatprep.mubr.bf16.mxu0 %v5140_v28  ;;  %v4414_v38 = vcombine.high %v394_v31, %v398_v32  ;;  %v386_v39 = vld [vmem:[#allocation2 + $0x8c0] sm:$0xff]  ;;  %v4413_v44 = vcombine.low %v394_v31, %v398_v32  ;;  %v211_v31 = vld [vmem:[#allocation2 + $0x348] sm:$0xff]  ;;  %v4240_v32 = vcombine.high %v219_v24, %v223_v25 }
  0x98   :  { %2628 = vmatprep.mubr.bf16.mxu1 %v5117_v58  ;;  %v390_v40 = vld [vmem:[#allocation2 + $0x8e0] sm:$0xff]  ;;  %v4231_v43 = vcombine.low %v211_v31, %v215_v33  ;;  %v183_v5 = vld [vmem:[#allocation2 + $0x268] sm:$0xff] }
  0x99   :  { %2558 = vmatpush1.bf16.msra.mxu0 %v4429_v54  ;;  %v4406_v46 = vcombine.high %v386_v39, %v390_v40  ;;  %v378_v47 = vld [vmem:[#allocation2 + $0x880] sm:$0xff]  ;;  %v4405_v52 = vcombine.low %v386_v39, %v390_v40  ;;  %v203_v39 = vld [vmem:[#allocation2 + $0x308] sm:$0xff]  ;;  %v4232_v40 = vcombine.high %v211_v31, %v215_v33 }
  0x9a   :  { %2599 = vmatpush1.bf16.msra.mxu1 %v4175_v29  ;;  %2559 = vmatprep.subr.bf16.mxu0 %v4422_v30  ;;  %v382_v48 = vld [vmem:[#allocation2 + $0x8a0] sm:$0xff]  ;;  %v4223_v51 = vcombine.low %v203_v39, %v207_v41  ;;  %v175_v13 = vld [vmem:[#allocation2 + $0x228] sm:$0xff] }
  0x9b   :  { %2600 = vmatprep.subr.bf16.mxu1 %v4168_v34  ;;  %v4398_v56 = vcombine.high %v378_v47, %v382_v48  ;;  %v370_v57 = vld [vmem:[#allocation2 + $0x840] sm:$0xff]  ;;  %v4397_v0 = vcombine.low %v378_v47, %v382_v48  ;;  %v195_v47 = vld [vmem:[#allocation2 + $0x2c8] sm:$0xff]  ;;  %v4224_v48 = vcombine.high %v203_v39, %v207_v41 }
  0x9c   :  { %v374_v60 = vld [vmem:[#allocation2 + $0x860] sm:$0xff]  ;;  %v4215_v63 = vcombine.low %v195_v47, %v199_v49  ;;  %v423_v24 = vld [vmem:[#allocation2 + $0x9e8] sm:$0xff] }
  0x9d   :  { %2560 = vmatpush1.bf16.msra.mxu0 %v4421_v36  ;;  %v4390_v2 = vcombine.high %v370_v57, %v374_v60  ;;  %v362_v3 = vld [vmem:[#allocation2 + $0x800] sm:$0xff]  ;;  %v4389_v8 = vcombine.low %v370_v57, %v374_v60  ;;  %v187_v57 = vld [vmem:[#allocation2 + $0x288] sm:$0xff]  ;;  %v4216_v60 = vcombine.high %v195_v47, %v199_v49 }
  0x9e   :  { %2601 = vmatpush1.bf16.msra.mxu1 %v4167_v37  ;;  %2561 = vmatprep.subr.bf16.mxu0 %v4414_v38  ;;  %v366_v4 = vld [vmem:[#allocation2 + $0x820] sm:$0xff]  ;;  %v4207_v7 = vcombine.low %v187_v57, %v191_v61  ;;  %v415_v31 = vld [vmem:[#allocation2 + $0x9a8] sm:$0xff] }
  0x9f   :  { %2602 = vmatprep.subr.bf16.mxu1 %v4160_v42  ;;  %v4382_v10 = vcombine.high %v362_v3, %v366_v4  ;;  %v482_v11 = vld [vmem:[#allocation2 + $0xbc0] sm:$0xff]  ;;  %v4381_v17 = vcombine.low %v362_v3, %v366_v4  ;;  %v179_v3 = vld [vmem:[#allocation2 + $0x248] sm:$0xff]  ;;  %v4208_v4 = vcombine.high %v187_v57, %v191_v61 }
  0xa0   :  { %v486_v12 = vld [vmem:[#allocation2 + $0xbe0] sm:$0xff]  ;;  %v4199_v15 = vcombine.low %v179_v3, %v183_v5  ;;  %v403_v39 = vld [vmem:[#allocation2 + $0x948] sm:$0xff] }
  0xa1   :  { %2562 = vmatpush1.bf16.msra.mxu0 %v4413_v44  ;;  %v4502_v21 = vcombine.high %v482_v11, %v486_v12  ;;  %v474_v22 = vld [vmem:[#allocation2 + $0xb80] sm:$0xff]  ;;  %v4501_v26 = vcombine.low %v482_v11, %v486_v12  ;;  %v171_v11 = vld [vmem:[#allocation2 + $0x208] sm:$0xff]  ;;  %v4200_v12 = vcombine.high %v179_v3, %v183_v5 }
  0xa2   :  { %2603 = vmatpush1.bf16.msra.mxu1 %v4159_v45  ;;  %2563 = vmatprep.subr.bf16.mxu0 %v4406_v46  ;;  %v478_v23 = vld [vmem:[#allocation2 + $0xba0] sm:$0xff]  ;;  %v4191_v25 = vcombine.low %v171_v11, %v175_v13  ;;  %v399_v47 = vld [vmem:[#allocation2 + $0x928] sm:$0xff] }
  0xa3   :  { %2604 = vmatprep.subr.bf16.mxu1 %v4152_v50  ;;  %v4494_v54 = vcombine.high %v474_v22, %v478_v23  ;;  %v466_v29 = vld [vmem:[#allocation2 + $0xb40] sm:$0xff]  ;;  %v4493_v34 = vcombine.low %v474_v22, %v478_v23  ;;  %v419_v22 = vld [vmem:[#allocation2 + $0x9c8] sm:$0xff]  ;;  %v4192_v23 = vcombine.high %v171_v11, %v175_v13 }
  0xa4   :  { %v470_v30 = vld [vmem:[#allocation2 + $0xb60] sm:$0xff]  ;;  %v391_v57 = vld [vmem:[#allocation2 + $0x8e8] sm:$0xff] }
  0xa5   :  { %2564 = vmatpush1.bf16.msra.mxu0 %v4405_v52  ;;  %v4486_v36 = vcombine.high %v466_v29, %v470_v30  ;;  %v458_v37 = vld [vmem:[#allocation2 + $0xb00] sm:$0xff]  ;;  %v4485_v42 = vcombine.low %v466_v29, %v470_v30  ;;  %v411_v29 = vld [vmem:[#allocation2 + $0x988] sm:$0xff]  ;;  %v4440_v30 = vcombine.high %v419_v22, %v423_v24 }
  0xa6   :  { %2605 = vmatpush1.bf16.msra.mxu1 %v4151_v55  ;;  %2565 = vmatprep.subr.bf16.mxu0 %v4398_v56  ;;  %v462_v38 = vld [vmem:[#allocation2 + $0xb20] sm:$0xff]  ;;  %v383_v3 = vld [vmem:[#allocation2 + $0x8a8] sm:$0xff] }
  0xa7   :  { %2606 = vmatprep.subr.bf16.mxu1 %v4144_v62  ;;  %v4478_v44 = vcombine.high %v458_v37, %v462_v38  ;;  %v450_v45 = vld [vmem:[#allocation2 + $0xac0] sm:$0xff]  ;;  %v4477_v50 = vcombine.low %v458_v37, %v462_v38  ;;  %v4432_v37 = vcombine.high %v411_v29, %v415_v31  ;;  %v279_v38 = vld [vmem:[#allocation2 + $0x568] sm:$0xff] }
  0xa8   :  { %v454_v46 = vld [vmem:[#allocation2 + $0xae0] sm:$0xff]  ;;  %v375_v11 = vld [vmem:[#allocation2 + $0x868] sm:$0xff] }
  0xa9   :  { %2566 = vmatpush1.bf16.msra.mxu0 %v4397_v0  ;;  %v4470_v52 = vcombine.high %v450_v45, %v454_v46  ;;  %v442_v55 = vld [vmem:[#allocation2 + $0xa80] sm:$0xff]  ;;  %v4469_v62 = vcombine.low %v450_v45, %v454_v46  ;;  %v395_v45 = vld [vmem:[#allocation2 + $0x908] sm:$0xff] }
  0xaa   :  { %2607 = vmatpush1.bf16.msra.mxu1 %v4143_v1  ;;  %2567 = vmatprep.subr.bf16.mxu0 %v4390_v2  ;;  %v446_v56 = vld [vmem:[#allocation2 + $0xaa0] sm:$0xff]  ;;  %v4415_v61 = vcombine.low %v395_v45, %v399_v47 }
  0xab   :  { %2608 = vmatprep.subr.bf16.mxu1 %v4136_v6  ;;  %v4462_v0 = vcombine.high %v442_v55, %v446_v56  ;;  %v434_v1 = vld [vmem:[#allocation2 + $0xa40] sm:$0xff]  ;;  %v4461_v6 = vcombine.low %v442_v55, %v446_v56  ;;  %v387_v55 = vld [vmem:[#allocation2 + $0x8c8] sm:$0xff]  ;;  %v4416_v56 = vcombine.high %v395_v45, %v399_v47 }
  0xac   :  { %v438_v2 = vld [vmem:[#allocation2 + $0xa60] sm:$0xff]  ;;  %v4407_v5 = vcombine.low %v387_v55, %v391_v57  ;;  %v471_v45 = vld [vmem:[#allocation2 + $0xb68] sm:$0xff] }
  0xad   :  { %2568 = vmatpush1.bf16.msra.mxu0 %v4389_v8  ;;  %v4454_v8 = vcombine.high %v434_v1, %v438_v2 }
  0xae   :  { %2609 = vmatpush1.bf16.msra.mxu1 %v4135_v9  ;;  %2569 = vmatprep.subr.bf16.mxu0 %v4382_v10  ;;  %v426_v9 = vld [vmem:[#allocation2 + $0xa00] sm:$0xff] }
  0xaf   :  { %2610 = vmatprep.subr.bf16.mxu1 %v4128_v14  ;;  %v430_v10 = vld [vmem:[#allocation2 + $0xa20] sm:$0xff]  ;;  %v4453_v14 = vcombine.low %v434_v1, %v438_v2  ;;  %v379_v1 = vld [vmem:[#allocation2 + $0x888] sm:$0xff]  ;;  %v4408_v2 = vcombine.high %v387_v55, %v391_v57 }
  0xb0   :  { %v4399_v13 = vcombine.low %v379_v1, %v383_v3  ;;  %v463_v55 = vld [vmem:[#allocation2 + $0xb28] sm:$0xff] }
  0xb1   :  { %2570 = vmatpush1.bf16.msra.mxu0 %v4381_v17  ;;  %v4446_v17 = vcombine.high %v426_v9, %v430_v10 }
  0xb2   :  { %2611 = vmatpush1.bf16.msra.mxu1 %v4127_v18  ;;  %2571 = vmatprep.subr.bf16.mxu0 %v4502_v21  ;;  %v291_v18 = vld [vmem:[#allocation2 + $0x5c8] sm:$0xff] }
  0xb3   :  { %2612 = vmatprep.subr.bf16.mxu1 %v4248_v53  ;;  %v295_v21 = vld [vmem:[#allocation2 + $0x5e8] sm:$0xff]  ;;  %v4445_v53 = vcombine.low %v426_v9, %v430_v10 }
  0xb4   :  { %v4311_v33 = vcombine.low %v291_v18, %v295_v21  ;;  %v247_v9 = vld [vmem:[#allocation2 + $0x468] sm:$0xff] }
  0xb5   :  { %2572 = vmatpush2.bf16.msra.mxu0 %v4501_v26  ;;  %v4312_v26 = vcombine.high %v291_v18, %v295_v21  ;;  %v371_v10 = vld [vmem:[#allocation2 + $0x848] sm:$0xff] }
  0xb6   :  { %2613 = vmatpush2.bf16.msra.mxu1 %v4247_v27  ;;  %2573 = vmatprep.subr.bf16.mxu0 %v4494_v54  ;;  %v283_v27 = vld [vmem:[#allocation2 + $0x588] sm:$0xff] }
  0xb7   :  { %2614 = vmatprep.subr.bf16.mxu1 %v4240_v32  ;;  %v287_v54 = vld [vmem:[#allocation2 + $0x5a8] sm:$0xff]  ;;  %v5148_v32 = vcombine.low %v5132_v19, %v5132_v19  ;;  %v4431_v19 = vcombine.low %v411_v29, %v415_v31 }
  0xb8   :  { %v4303_v41 = vcombine.low %v283_v27, %v287_v54  ;;  %v239_v18 = vld [vmem:[#allocation2 + $0x428] sm:$0xff] }
  0xb9   :  { %2574 = vmatpush2.bf16.msra.mxu0 %v4493_v34  ;;  %v4439_v34 = vcombine.low %v419_v22, %v423_v24  ;;  %v363_v21 = vld [vmem:[#allocation2 + $0x808] sm:$0xff]  ;;  %v4391_v24 = vcombine.low %v371_v10, %v375_v11 }
  0xba   :  { %2615 = vmatpush2.bf16.msra.mxu1 %v4239_v35  ;;  %2575 = vmatprep.subr.bf16.mxu0 %v4486_v36  ;;  %v4304_v35 = vcombine.high %v283_v27, %v287_v54  ;;  %v275_v36 = vld [vmem:[#allocation2 + $0x548] sm:$0xff] }
  0xbb   :  { %2616 = vmatprep.subr.bf16.mxu1 %v4232_v40  ;;  %v407_v40 = vld [vmem:[#allocation2 + $0x968] sm:$0xff] }
  0xbc   :  { %v4424_v46 = vcombine.high %v403_v39, %v407_v40  ;;  %v4423_v49 = vcombine.low %v403_v39, %v407_v40  ;;  %v367_v22 = vld [vmem:[#allocation2 + $0x828] sm:$0xff] }
  0xbd   :  { %2576 = vmatpush2.bf16.msra.mxu0 %v4485_v42  ;;  %v4296_v42 = vcombine.high %v275_v36, %v279_v38  ;;  %v359_v27 = vld [vmem:[#allocation2 + $0x7e8] sm:$0xff]  ;;  %v4383_v31 = vcombine.low %v363_v21, %v367_v22 }
  0xbe   :  { %2617 = vmatpush2.bf16.msra.mxu1 %v4231_v43  ;;  %2577 = vmatprep.subr.bf16.mxu0 %v4478_v44  ;;  %v267_v43 = vld [vmem:[#allocation2 + $0x508] sm:$0xff] }
  0xbf   :  { %2618 = vmatprep.subr.bf16.mxu1 %v4224_v48  ;;  %v271_v44 = vld [vmem:[#allocation2 + $0x528] sm:$0xff]  ;;  %v4295_v48 = vcombine.low %v275_v36, %v279_v38 }
  0xc0   :  { %v483_v54 = vld [vmem:[#allocation2 + $0xbc8] sm:$0xff] }
  0xc1   :  { %2578 = vmatpush2.bf16.msra.mxu0 %v4477_v50  ;;  %v4288_v50 = vcombine.high %v267_v43, %v271_v44  ;;  %v487_v29 = vld [vmem:[#allocation2 + $0xbe8] sm:$0xff] }
  0xc2   :  { %2619 = vmatpush2.bf16.msra.mxu1 %v4223_v51  ;;  %2579 = vmatprep.subr.bf16.mxu0 %v4470_v52  ;;  %v259_v51 = vld [vmem:[#allocation2 + $0x4c8] sm:$0xff]  ;;  %v4503_v40 = vcombine.low %v483_v54, %v487_v29 }
  0xc3   :  { %2620 = vmatprep.subr.bf16.mxu1 %v4216_v60  ;;  %v263_v52 = vld [vmem:[#allocation2 + $0x4e8] sm:$0xff]  ;;  %v4287_v60 = vcombine.low %v267_v43, %v271_v44 }
  0xc4   :  { %v351_v36 = vld [vmem:[#allocation2 + $0x7a8] sm:$0xff] }
  0xc5   :  { %2580 = vmatpush2.bf16.msra.mxu0 %v4469_v62  ;;  %v4280_v62 = vcombine.high %v259_v51, %v263_v52  ;;  %v479_v38 = vld [vmem:[#allocation2 + $0xba8] sm:$0xff] }
  0xc6   :  { %2621 = vmatpush2.bf16.msra.mxu1 %v4215_v63  ;;  %2581 = vmatprep.subr.bf16.mxu0 %v4462_v0  ;;  %v251_v63 = vld [vmem:[#allocation2 + $0x488] sm:$0xff] }
  0xc7   :  { %2622 = vmatprep.subr.bf16.mxu1 %v4208_v4  ;;  %v255_v0 = vld [vmem:[#allocation2 + $0x4a8] sm:$0xff]  ;;  %v4279_v4 = vcombine.low %v259_v51, %v263_v52 }
  0xc8   :  { %v343_v43 = vld [vmem:[#allocation2 + $0x768] sm:$0xff] }
  0xc9   :  { %2582 = vmatpush2.bf16.msra.mxu0 %v4461_v6  ;;  %v4272_v6 = vcombine.high %v251_v63, %v255_v0  ;;  %v467_v44 = vld [vmem:[#allocation2 + $0xb48] sm:$0xff] }
  0xca   :  { %2623 = vmatpush2.bf16.msra.mxu1 %v4207_v7  ;;  %2583 = vmatprep.subr.bf16.mxu0 %v4454_v8  ;;  %v243_v7 = vld [vmem:[#allocation2 + $0x448] sm:$0xff]  ;;  %v4400_v8 = vcombine.high %v379_v1, %v383_v3  ;;  %v4487_v57 = vcombine.low %v467_v44, %v471_v45 }
  0xcb   :  { %2624 = vmatprep.subr.bf16.mxu1 %v4200_v12  ;;  %v4271_v12 = vcombine.low %v251_v63, %v255_v0  ;;  %v335_v51 = vld [vmem:[#allocation2 + $0x728] sm:$0xff] }
  0xcc   :  { %v459_v52 = vld [vmem:[#allocation2 + $0xb08] sm:$0xff] }
  0xcd   :  { %2584 = vmatpush2.bf16.msra.mxu0 %v4453_v14  ;;  %v4264_v14 = vcombine.high %v243_v7, %v247_v9  ;;  %v327_v63 = vld [vmem:[#allocation2 + $0x6e8] sm:$0xff]  ;;  %v4479_v3 = vcombine.low %v459_v52, %v463_v55 }
  0xce   :  { %2625 = vmatpush2.bf16.msra.mxu1 %v4199_v15  ;;  %2585 = vmatprep.subr.bf16.mxu0 %v4446_v17  ;;  %v4392_v15 = vcombine.high %v371_v10, %v375_v11  ;;  %v235_v17 = vld [vmem:[#allocation2 + $0x408] sm:$0xff] }
  0xcf   :  { %2626 = vmatprep.subr.bf16.mxu1 %v4192_v23  ;;  %v4263_v23 = vcombine.low %v243_v7, %v247_v9  ;;  %v451_v0 = vld [vmem:[#allocation2 + $0xac8] sm:$0xff] }
  0xd0   :  { %v455_v1 = vld [vmem:[#allocation2 + $0xae8] sm:$0xff] }
  0xd1   :  { %2586 = vmatpush2.bf16.msra.mxu0 %v4445_v53  ;;  %v4256_v53 = vcombine.high %v235_v17, %v239_v18  ;;  %v319_v7 = vld [vmem:[#allocation2 + $0x6a8] sm:$0xff]  ;;  %v4471_v11 = vcombine.low %v451_v0, %v455_v1 }
  0xd2   :  { %2627 = vmatpush2.bf16.msra.mxu1 %v4191_v25  ;;  %2637 = vmatprep.subr.bf16.mxu0 %v4312_v26  ;;  %v4384_v25 = vcombine.high %v363_v21, %v367_v22  ;;  %v355_v26 = vld [vmem:[#allocation2 + $0x7c8] sm:$0xff] }
  0xd3   :  { %2678 = vmatprep.subr.bf16.mxu1 %v4440_v30  ;;  %v4255_v30 = vcombine.low %v235_v17, %v239_v18  ;;  %v4375_v39 = vcombine.low %v355_v26, %v359_v27  ;;  %v447_v9 = vld [vmem:[#allocation2 + $0xaa8] sm:$0xff] }
  0xd4   :  { %2588 = vmatmul.mubr.bf16.vlgmr.msra.gmra.mxu0 %v5148_v32  ;;  %v435_v17 = vld [vmem:[#allocation2 + $0xa48] sm:$0xff] }
  0xd5   :  { %2629 = vmatmul.mubr.bf16.vlgmr.msra.gmra.mxu1 %v5127_v16  ;;  %2638 = vmatpush1.bf16.msra.mxu0 %v4311_v33  ;;  %v4376_v33 = vcombine.high %v355_v26, %v359_v27  ;;  %v439_v18 = vld [vmem:[#allocation2 + $0xa68] sm:$0xff] }
  0xd6   :  { %2679 = vmatpush1.bf16.msra.mxu1 %v4439_v34  ;;  %2639 = vmatprep.subr.bf16.mxu0 %v4304_v35  ;;  %v4504_v34 = vcombine.high %v483_v54, %v487_v29  ;;  %v347_v35 = vld [vmem:[#allocation2 + $0x788] sm:$0xff]  ;;  %v4455_v29 = vcombine.low %v435_v17, %v439_v18 }
  0xd7   :  { %2680 = vmatprep.subr.bf16.mxu1 %v4432_v37  ;;  %2669 = vmatprep.mubr.bf16.mxu0 %v5121_v59  ;;  %v475_v37 = vld [vmem:[#allocation2 + $0xb88] sm:$0xff] }
  0xd8   :  { %2710 = vmatprep.mubr.bf16.mxu1 %v5140_v28  ;;  %v4495_v47 = vcombine.low %v475_v37, %v479_v38  ;;  %v427_v26 = vld [vmem:[#allocation2 + $0xa08] sm:$0xff] }
  0xd9   :  { %2640 = vmatpush1.bf16.msra.mxu0 %v4303_v41  ;;  %v4368_v41 = vcombine.high %v347_v35, %v351_v36  ;;  %v431_v27 = vld [vmem:[#allocation2 + $0xa28] sm:$0xff] }
  0xda   :  { %2681 = vmatpush1.bf16.msra.mxu1 %v4431_v19  ;;  %2641 = vmatprep.subr.bf16.mxu0 %v4296_v42  ;;  %v4496_v19 = vcombine.high %v475_v37, %v479_v38  ;;  %v339_v42 = vld [vmem:[#allocation2 + $0x748] sm:$0xff]  ;;  %v4447_v38 = vcombine.low %v427_v26, %v431_v27 }
  0xdb   :  { %2682 = vmatprep.subr.bf16.mxu1 %v4424_v46  ;;  %v4367_v46 = vcombine.low %v347_v35, %v351_v36  ;;  %v292_v35 = vld [vmem:[#allocation2 + $0x5d0] sm:$0xff] }
  0xdc   :  { %v296_v36 = vld [vmem:[#allocation2 + $0x5f0] sm:$0xff] }
  0xdd   :  { %2642 = vmatpush1.bf16.msra.mxu0 %v4295_v48  ;;  %v4360_v48 = vcombine.high %v339_v42, %v343_v43 }
  0xde   :  { %2683 = vmatpush1.bf16.msra.mxu1 %v4423_v49  ;;  %2643 = vmatprep.subr.bf16.mxu0 %v4288_v50  ;;  %v4488_v49 = vcombine.high %v467_v44, %v471_v45  ;;  %v331_v50 = vld [vmem:[#allocation2 + $0x708] sm:$0xff]  ;;  %v4313_v45 = vcombine.low %v292_v35, %v296_v36 }
  0xdf   :  { %2684 = vmatprep.subr.bf16.mxu1 %v4416_v56  ;;  %v4359_v56 = vcombine.low %v339_v42, %v343_v43  ;;  %v284_v42 = vld [vmem:[#allocation2 + $0x590] sm:$0xff] }
  0xe0   :  { %v288_v43 = vld [vmem:[#allocation2 + $0x5b0] sm:$0xff] }
  0xe1   :  { %2644 = vmatpush1.bf16.msra.mxu0 %v4287_v60  ;;  %v4352_v60 = vcombine.high %v331_v50, %v335_v51 }
  0xe2   :  { %2685 = vmatpush1.bf16.msra.mxu1 %v4415_v61  ;;  %2645 = vmatprep.subr.bf16.mxu0 %v4280_v62  ;;  %v4480_v61 = vcombine.high %v459_v52, %v463_v55  ;;  %v323_v62 = vld [vmem:[#allocation2 + $0x6c8] sm:$0xff]  ;;  %v4305_v55 = vcombine.low %v284_v42, %v288_v43 }
  0xe3   :  { %2686 = vmatprep.subr.bf16.mxu1 %v4408_v2  ;;  %v4351_v2 = vcombine.low %v331_v50, %v335_v51  ;;  %v4343_v10 = vcombine.low %v323_v62, %v327_v63  ;;  %v276_v50 = vld [vmem:[#allocation2 + $0x550] sm:$0xff] }
  0xe4   :  { %v280_v51 = vld [vmem:[#allocation2 + $0x570] sm:$0xff] }
  0xe5   :  { %2646 = vmatpush1.bf16.msra.mxu0 %v4279_v4  ;;  %v4344_v4 = vcombine.high %v323_v62, %v327_v63  ;;  %v268_v62 = vld [vmem:[#allocation2 + $0x510] sm:$0xff] }
  0xe6   :  { %2687 = vmatpush1.bf16.msra.mxu1 %v4407_v5  ;;  %2647 = vmatprep.subr.bf16.mxu0 %v4272_v6  ;;  %v4472_v5 = vcombine.high %v451_v0, %v455_v1  ;;  %v315_v6 = vld [vmem:[#allocation2 + $0x688] sm:$0xff]  ;;  %v272_v63 = vld [vmem:[#allocation2 + $0x530] sm:$0xff]  ;;  %v4297_v1 = vcombine.low %v276_v50, %v280_v51 }
  0xe7   :  { %2688 = vmatprep.subr.bf16.mxu1 %v4400_v8  ;;  %v443_v8 = vld [vmem:[#allocation2 + $0xa88] sm:$0xff]  ;;  %v4335_v21 = vcombine.low %v315_v6, %v319_v7 }
  0xe8   :  { %v4463_v22 = vcombine.low %v443_v8, %v447_v9 }
  0xe9   :  { %2648 = vmatpush1.bf16.msra.mxu0 %v4271_v12  ;;  %v4336_v12 = vcombine.high %v315_v6, %v319_v7  ;;  %v260_v6 = vld [vmem:[#allocation2 + $0x4d0] sm:$0xff] }
  0xea   :  { %2689 = vmatpush1.bf16.msra.mxu1 %v4399_v13  ;;  %2649 = vmatprep.subr.bf16.mxu0 %v4264_v14  ;;  %v4464_v13 = vcombine.high %v443_v8, %v447_v9  ;;  %v307_v14 = vld [vmem:[#allocation2 + $0x648] sm:$0xff]  ;;  %v264_v7 = vld [vmem:[#allocation2 + $0x4f0] sm:$0xff]  ;;  %v4289_v9 = vcombine.low %v268_v62, %v272_v63 }
  0xeb   :  { %2690 = vmatprep.subr.bf16.mxu1 %v4392_v15  ;;  %v311_v15 = vld [vmem:[#allocation2 + $0x668] sm:$0xff] }
  0xec   :  { %v4327_v54 = vcombine.low %v307_v14, %v311_v15 }
  0xed   :  { %2650 = vmatpush1.bf16.msra.mxu0 %v4263_v23  ;;  %v4328_v23 = vcombine.high %v307_v14, %v311_v15  ;;  %v252_v14 = vld [vmem:[#allocation2 + $0x490] sm:$0xff] }
  0xee   :  { %2691 = vmatpush1.bf16.msra.mxu1 %v4391_v24  ;;  %2651 = vmatprep.subr.bf16.mxu0 %v4256_v53  ;;  %v4456_v24 = vcombine.high %v435_v17, %v439_v18  ;;  %v299_v53 = vld [vmem:[#allocation2 + $0x608] sm:$0xff]  ;;  %v256_v15 = vld [vmem:[#allocation2 + $0x4b0] sm:$0xff]  ;;  %v4281_v18 = vcombine.low %v260_v6, %v264_v7 }
  0xef   :  { %2692 = vmatprep.subr.bf16.mxu1 %v4384_v25  ;;  %v303_v25 = vld [vmem:[#allocation2 + $0x628] sm:$0xff] }
  0xf0   :  { %v4319_v37 = vcombine.low %v299_v53, %v303_v25 }
  0xf1   :  { %2652 = vmatpush1.bf16.msra.mxu0 %v4255_v30  ;;  %v4320_v30 = vcombine.high %v299_v53, %v303_v25  ;;  %v244_v53 = vld [vmem:[#allocation2 + $0x450] sm:$0xff] }
  0xf2   :  { %2693 = vmatpush1.bf16.msra.mxu1 %v4383_v31  ;;  %2653 = vmatprep.subr.bf16.mxu0 %v4376_v33  ;;  %v4448_v31 = vcombine.high %v427_v26, %v431_v27  ;;  %v164_v33 = vld [vmem:[#allocation2 + $0x1d0] sm:$0xff]  ;;  %v4273_v27 = vcombine.low %v252_v14, %v256_v15 }
  0xf3   :  { %2694 = vmatprep.subr.bf16.mxu1 %v4504_v34  ;;  %v168_v34 = vld [vmem:[#allocation2 + $0x1f0] sm:$0xff] }
  0xf4   :  { %v4185_v44 = vcombine.low %v164_v33, %v168_v34  ;;  %v248_v25 = vld [vmem:[#allocation2 + $0x470] sm:$0xff] }
  0xf5   :  { %2654 = vmatpush2.bf16.msra.mxu0 %v4375_v39  ;;  %v4186_v39 = vcombine.high %v164_v33, %v168_v34  ;;  %v236_v33 = vld [vmem:[#allocation2 + $0x410] sm:$0xff] }
  0xf6   :  { %2695 = vmatpush2.bf16.msra.mxu1 %v4503_v40  ;;  %2655 = vmatprep.subr.bf16.mxu0 %v4368_v41  ;;  %v4314_v40 = vcombine.high %v292_v35, %v296_v36  ;;  %v156_v41 = vld [vmem:[#allocation2 + $0x190] sm:$0xff]  ;;  %v4265_v36 = vcombine.low %v244_v53, %v248_v25 }
  0xf7   :  { %2696 = vmatprep.subr.bf16.mxu1 %v4496_v19  ;;  %v160_v19 = vld [vmem:[#allocation2 + $0x1b0] sm:$0xff] }
  0xf8   :  { %v4177_v52 = vcombine.low %v156_v41, %v160_v19  ;;  %v240_v34 = vld [vmem:[#allocation2 + $0x430] sm:$0xff] }
  0xf9   :  { %2656 = vmatpush2.bf16.msra.mxu0 %v4367_v46  ;;  %v4178_v46 = vcombine.high %v156_v41, %v160_v19  ;;  %v356_v41 = vld [vmem:[#allocation2 + $0x7d0] sm:$0xff] }
  0xfa   :  { %2697 = vmatpush2.bf16.msra.mxu1 %v4495_v47  ;;  %2657 = vmatprep.subr.bf16.mxu0 %v4360_v48  ;;  %v4306_v47 = vcombine.high %v284_v42, %v288_v43  ;;  %v148_v48 = vld [vmem:[#allocation2 + $0x150] sm:$0xff]  ;;  %v4257_v43 = vcombine.low %v236_v33, %v240_v34 }
  0xfb   :  { %2698 = vmatprep.subr.bf16.mxu1 %v4488_v49  ;;  %v152_v49 = vld [vmem:[#allocation2 + $0x170] sm:$0xff] }
  0xfc   :  { %v4169_v0 = vcombine.low %v148_v48, %v152_v49  ;;  %v360_v19 = vld [vmem:[#allocation2 + $0x7f0] sm:$0xff] }
  0xfd   :  { %2658 = vmatpush2.bf16.msra.mxu0 %v4359_v56  ;;  %v4170_v56 = vcombine.high %v148_v48, %v152_v49  ;;  %v348_v48 = vld [vmem:[#allocation2 + $0x790] sm:$0xff] }
  0xfe   :  { %2699 = vmatpush2.bf16.msra.mxu1 %v4487_v57  ;;  %2659 = vmatprep.subr.bf16.mxu0 %v4352_v60  ;;  %v4298_v57 = vcombine.high %v276_v50, %v280_v51  ;;  %v140_v60 = vld [vmem:[#allocation2 + $0x110] sm:$0xff]  ;;  %v4377_v51 = vcombine.low %v356_v41, %v360_v19 }
  0xff   :  { %2700 = vmatprep.subr.bf16.mxu1 %v4480_v61  ;;  %v144_v61 = vld [vmem:[#allocation2 + $0x130] sm:$0xff] }
 0x100   :  { %v4161_v8 = vcombine.low %v140_v60, %v144_v61  ;;  %v352_v49 = vld [vmem:[#allocation2 + $0x7b0] sm:$0xff] }
 0x101   :  { %2660 = vmatpush2.bf16.msra.mxu0 %v4351_v2  ;;  %v4162_v2 = vcombine.high %v140_v60, %v144_v61  ;;  %v340_v60 = vld [vmem:[#allocation2 + $0x750] sm:$0xff] }
 0x102   :  { %2701 = vmatpush2.bf16.msra.mxu1 %v4479_v3  ;;  %2661 = vmatprep.subr.bf16.mxu0 %v4344_v4  ;;  %v4290_v3 = vcombine.high %v268_v62, %v272_v63  ;;  %v132_v4 = vld [vmem:[#allocation2 + $0xd0] sm:$0xff]  ;;  %v4369_v63 = vcombine.low %v348_v48, %v352_v49 }
 0x103   :  { %2702 = vmatprep.subr.bf16.mxu1 %v4472_v5  ;;  %v136_v5 = vld [vmem:[#allocation2 + $0xf0] sm:$0xff] }
 0x104   :  { %v4153_v17 = vcombine.low %v132_v4, %v136_v5  ;;  %v344_v61 = vld [vmem:[#allocation2 + $0x770] sm:$0xff] }
 0x105   :  { %2662 = vmatpush2.bf16.msra.mxu0 %v4343_v10  ;;  %v4154_v10 = vcombine.high %v132_v4, %v136_v5  ;;  %v332_v4 = vld [vmem:[#allocation2 + $0x710] sm:$0xff] }
 0x106   :  { %2703 = vmatpush2.bf16.msra.mxu1 %v4471_v11  ;;  %2663 = vmatprep.subr.bf16.mxu0 %v4336_v12  ;;  %v4282_v11 = vcombine.high %v260_v6, %v264_v7  ;;  %v124_v12 = vld [vmem:[#allocation2 + $0x90] sm:$0xff]  ;;  %v4361_v7 = vcombine.low %v340_v60, %v344_v61 }
 0x107   :  { %2704 = vmatprep.subr.bf16.mxu1 %v4464_v13  ;;  %v128_v13 = vld [vmem:[#allocation2 + $0xb0] sm:$0xff] }
 0x108   :  { %v4145_v26 = vcombine.low %v124_v12, %v128_v13  ;;  %v336_v5 = vld [vmem:[#allocation2 + $0x730] sm:$0xff] }
 0x109   :  { %2664 = vmatpush2.bf16.msra.mxu0 %v4335_v21  ;;  %v4146_v21 = vcombine.high %v124_v12, %v128_v13  ;;  %v324_v12 = vld [vmem:[#allocation2 + $0x6d0] sm:$0xff] }
 0x10a   :  { %2705 = vmatpush2.bf16.msra.mxu1 %v4463_v22  ;;  %2665 = vmatprep.subr.bf16.mxu0 %v4328_v23  ;;  %v4274_v22 = vcombine.high %v252_v14, %v256_v15  ;;  %v116_v23 = vld [vmem:[#allocation2 + $0x50] sm:$0xff]  ;;  %v4353_v15 = vcombine.low %v332_v4, %v336_v5 }
 0x10b   :  { %2706 = vmatprep.subr.bf16.mxu1 %v4456_v24  ;;  %v120_v24 = vld [vmem:[#allocation2 + $0x70] sm:$0xff] }
 0x10c   :  { %v4137_v35 = vcombine.low %v116_v23, %v120_v24  ;;  %v328_v13 = vld [vmem:[#allocation2 + $0x6f0] sm:$0xff] }
 0x10d   :  { %2666 = vmatpush2.bf16.msra.mxu0 %v4327_v54  ;;  %v4138_v54 = vcombine.high %v116_v23, %v120_v24  ;;  %v316_v23 = vld [vmem:[#allocation2 + $0x690] sm:$0xff] }
 0x10e   :  { %2707 = vmatpush2.bf16.msra.mxu1 %v4455_v29  ;;  %2667 = vmatprep.subr.bf16.mxu0 %v4320_v30  ;;  %v4266_v29 = vcombine.high %v244_v53, %v248_v25  ;;  %v108_v30 = vld [vmem:[#allocation2 + $0x10] sm:$0xff]  ;;  %v4345_v25 = vcombine.low %v324_v12, %v328_v13 }
 0x10f   :  { %2708 = vmatprep.subr.bf16.mxu1 %v4448_v31  ;;  %v112_v31 = vld [vmem:[#allocation2 + $0x30] sm:$0xff] }
 0x110   :  { %v4129_v42 = vcombine.low %v108_v30, %v112_v31  ;;  %v320_v24 = vld [vmem:[#allocation2 + $0x6b0] sm:$0xff] }
 0x111   :  { %2668 = vmatpush2.bf16.msra.mxu0 %v4319_v37  ;;  %v4130_v37 = vcombine.high %v108_v30, %v112_v31  ;;  %v308_v30 = vld [vmem:[#allocation2 + $0x650] sm:$0xff] }
 0x112   :  { %2709 = vmatpush2.bf16.msra.mxu1 %v4447_v38  ;;  %2719 = vmatprep.subr.bf16.mxu0 %v4186_v39  ;;  %v4258_v38 = vcombine.high %v236_v33, %v240_v34  ;;  %v228_v39 = vld [vmem:[#allocation2 + $0x3d0] sm:$0xff]  ;;  %v492_v34 = vlaneseq }
 0x113   :  { %2760 = vmatprep.subr.bf16.mxu1 %v4314_v40  ;;  %v232_v40 = vld [vmem:[#allocation2 + $0x3f0] sm:$0xff] }
 0x114   :  { %2670 = vmatmul.mubr.bf16.vlgmr.msra.gmra.mxu0 %v5136_v20  ;;  %v4249_v50 = vcombine.low %v228_v39, %v232_v40  ;;  %v312_v31 = vld [vmem:[#allocation2 + $0x670] sm:$0xff] }
 0x115   :  { %2711 = vmatmul.mubr.bf16.vlgmr.msra.gmra.mxu1 %v5148_v32  ;;  %2720 = vmatpush1.bf16.msra.mxu0 %v4185_v44  ;;  %v4250_v44 = vcombine.high %v228_v39, %v232_v40  ;;  %v176_v39 = vld [vmem:[#allocation2 + $0x230] sm:$0xff] }
 0x116   :  { %2761 = vmatpush1.bf16.msra.mxu1 %v4313_v45  ;;  %2721 = vmatprep.subr.bf16.mxu0 %v4178_v46  ;;  %v4378_v45 = vcombine.high %v356_v41, %v360_v19  ;;  %v220_v46 = vld [vmem:[#allocation2 + $0x390] sm:$0xff] }
 0x117   :  { %2762 = vmatprep.subr.bf16.mxu1 %v4306_v47  ;;  %2751 = vmatprep.mubr.bf16.mxu0 %v5117_v58  ;;  %v224_v47 = vld [vmem:[#allocation2 + $0x3b0] sm:$0xff] }
 0x118   :  { %2792 = vmatprep.mubr.bf16.mxu1 %v5121_v59  ;;  %v4241_v62 = vcombine.low %v220_v46, %v224_v47  ;;  %v300_v40 = vld [vmem:[#allocation2 + $0x610] sm:$0xff] }
 0x119   :  { %2722 = vmatpush1.bf16.msra.mxu0 %v4177_v52  ;;  %v4242_v52 = vcombine.high %v220_v46, %v224_v47  ;;  %v304_v41 = vld [vmem:[#allocation2 + $0x630] sm:$0xff] }
 0x11a   :  { %2763 = vmatpush1.bf16.msra.mxu1 %v4305_v55  ;;  %2723 = vmatprep.subr.bf16.mxu0 %v4170_v56  ;;  %v4370_v55 = vcombine.high %v348_v48, %v352_v49  ;;  %v212_v56 = vld [vmem:[#allocation2 + $0x350] sm:$0xff]  ;;  %v165_v48 = vld [vmem:[#allocation2 + $0x1d8] sm:$0xff] }
 0x11b   :  { %2764 = vmatprep.subr.bf16.mxu1 %v4298_v57  ;;  %v216_v57 = vld [vmem:[#allocation2 + $0x370] sm:$0xff]  ;;  %v169_v49 = vld [vmem:[#allocation2 + $0x1f8] sm:$0xff] }
 0x11c   :  { %v4233_v6 = vcombine.low %v212_v56, %v216_v57  ;;  %v420_v46 = vld [vmem:[#allocation2 + $0x9d0] sm:$0xff] }
 0x11d   :  { %2724 = vmatpush1.bf16.msra.mxu0 %v4169_v0  ;;  %v4234_v0 = vcombine.high %v212_v56, %v216_v57  ;;  %v424_v47 = vld [vmem:[#allocation2 + $0x9f0] sm:$0xff]  ;;  %v4188_v57 = vcombine.high %v165_v48, %v169_v49 }
 0x11e   :  { %2765 = vmatpush1.bf16.msra.mxu1 %v4297_v1  ;;  %2725 = vmatprep.subr.bf16.mxu0 %v4162_v2  ;;  %v4362_v1 = vcombine.high %v340_v60, %v344_v61  ;;  %v204_v2 = vld [vmem:[#allocation2 + $0x310] sm:$0xff]  ;;  %v4442_v56 = vcombine.high %v420_v46, %v424_v47 }
 0x11f   :  { %2766 = vmatprep.subr.bf16.mxu1 %v4290_v3  ;;  %v208_v3 = vld [vmem:[#allocation2 + $0x330] sm:$0xff] }
 0x120   :  { %v4225_v14 = vcombine.low %v204_v2, %v208_v3  ;;  %v412_v61 = vld [vmem:[#allocation2 + $0x990] sm:$0xff] }
 0x121   :  { %2726 = vmatpush1.bf16.msra.mxu0 %v4161_v8  ;;  %v4226_v8 = vcombine.high %v204_v2, %v208_v3  ;;  %v4441_v2 = vcombine.low %v420_v46, %v424_v47  ;;  %v4187_v3 = vcombine.low %v165_v48, %v169_v49  ;;  %v384_v46 = vld [vmem:[#allocation2 + $0x8b0] sm:$0xff]  ;;  %v125_v47 = vld [vmem:[#allocation2 + $0x98] sm:$0xff] }
 0x122   :  { %2767 = vmatpush1.bf16.msra.mxu1 %v4289_v9  ;;  %2727 = vmatprep.subr.bf16.mxu0 %v4154_v10  ;;  %v4354_v9 = vcombine.high %v332_v4, %v336_v5  ;;  %v196_v10 = vld [vmem:[#allocation2 + $0x2d0] sm:$0xff]  ;;  %v129_v48 = vld [vmem:[#allocation2 + $0xb8] sm:$0xff] }
 0x123   :  { %2768 = vmatprep.subr.bf16.mxu1 %v4282_v11  ;;  %v200_v11 = vld [vmem:[#allocation2 + $0x2f0] sm:$0xff] }
 0x124   :  { %v4217_v53 = vcombine.low %v196_v10, %v200_v11 }
 0x125   :  { %2728 = vmatpush1.bf16.msra.mxu0 %v4153_v17  ;;  %v4218_v17 = vcombine.high %v196_v10, %v200_v11  ;;  %v149_v10 = vld [vmem:[#allocation2 + $0x158] sm:$0xff] }
 0x126   :  { %2769 = vmatpush1.bf16.msra.mxu1 %v4281_v18  ;;  %2729 = vmatprep.subr.bf16.mxu0 %v4146_v21  ;;  %v4346_v18 = vcombine.high %v324_v12, %v328_v13  ;;  %v188_v21 = vld [vmem:[#allocation2 + $0x290] sm:$0xff]  ;;  %v153_v11 = vld [vmem:[#allocation2 + $0x178] sm:$0xff] }
 0x127   :  { %2770 = vmatprep.subr.bf16.mxu1 %v4274_v22  ;;  %v192_v22 = vld [vmem:[#allocation2 + $0x2b0] sm:$0xff] }
 0x128   :  { %v4209_v33 = vcombine.low %v188_v21, %v192_v22 }
 0x129   :  { %2730 = vmatpush1.bf16.msra.mxu0 %v4145_v26  ;;  %v4210_v26 = vcombine.high %v188_v21, %v192_v22 }
 0x12a   :  { %2771 = vmatpush1.bf16.msra.mxu1 %v4273_v27  ;;  %2731 = vmatprep.subr.bf16.mxu0 %v4138_v54  ;;  %v4338_v27 = vcombine.high %v316_v23, %v320_v24  ;;  %v180_v54 = vld [vmem:[#allocation2 + $0x250] sm:$0xff] }
 0x12b   :  { %2772 = vmatprep.subr.bf16.mxu1 %v4266_v29  ;;  %v184_v29 = vld [vmem:[#allocation2 + $0x270] sm:$0xff] }
 0x12c   :  { %v4201_v19 = vcombine.low %v180_v54, %v184_v29 }
 0x12d   :  { %2732 = vmatpush1.bf16.msra.mxu0 %v4137_v35  ;;  %v4337_v35 = vcombine.low %v316_v23, %v320_v24  ;;  %v4172_v24 = vcombine.high %v149_v10, %v153_v11 }
 0x12e   :  { %2773 = vmatpush1.bf16.msra.mxu1 %v4265_v36  ;;  %2733 = vmatprep.subr.bf16.mxu0 %v4130_v37  ;;  %v4202_v36 = vcombine.high %v180_v54, %v184_v29  ;;  %v4330_v37 = vcombine.high %v308_v30, %v312_v31  ;;  %v145_v54 = vld [vmem:[#allocation2 + $0x138] sm:$0xff] }
 0x12f   :  { %2774 = vmatprep.subr.bf16.mxu1 %v4258_v38  ;;  %v172_v38 = vld [vmem:[#allocation2 + $0x210] sm:$0xff] }
 0x131   :  { %2734 = vmatpush1.bf16.msra.mxu0 %v4129_v42  ;;  %v5158_v42 = vshrl.u32 %v492_v34, 7  ;;  %v4171_v34 = vcombine.low %v149_v10, %v153_v11 }
 0x132   :  { %2775 = vmatpush1.bf16.msra.mxu1 %v4257_v43  ;;  %2735 = vmatprep.subr.bf16.mxu0 %v4250_v44  ;;  %v4329_v43 = vcombine.low %v308_v30, %v312_v31  ;;  %v4194_v44 = vcombine.high %v172_v38, %v176_v39 }
 0x133   :  { %2776 = vmatprep.subr.bf16.mxu1 %v4378_v45  ;;  %v4322_v45 = vcombine.high %v300_v40, %v304_v41  ;;  %v498_v60 = vsub.s32 1, %v5158_v42 }
 0x135   :  { %2736 = vmatpush2.bf16.msra.mxu0 %v4249_v50  ;;  %v4193_v50 = vcombine.low %v172_v38, %v176_v39  ;;  %v388_v38 = vld [vmem:[#allocation2 + $0x8d0] sm:$0xff] }
 0x136   :  { %2777 = vmatpush2.bf16.msra.mxu1 %v4377_v51  ;;  %2737 = vmatprep.subr.bf16.mxu0 %v4242_v52  ;;  %v494_v51 = vsub.s32 0, %v5158_v42  ;;  %v4321_v52 = vcombine.low %v300_v40, %v304_v41  ;;  %v392_v39 = vld [vmem:[#allocation2 + $0x8f0] sm:$0xff]  ;;  %v133_v40 = vld [vmem:[#allocation2 + $0xd8] sm:$0xff] }
 0x137   :  { %2778 = vmatprep.subr.bf16.mxu1 %v4370_v55  ;;  %v5161_v55 = vld [vmem:[#allocation4] sm:$0xff]  ;;  %v137_v41 = vld [vmem:[#allocation2 + $0xf8] sm:$0xff]  ;;  %v4409_v49 = vcombine.low %v388_v38, %v392_v39 }
 0x138   :  { %v499_v5 = vrot.slane %v5161_v55, %v498_v60 }
 0x139   :  { %2738 = vmatpush2.bf16.msra.mxu0 %v4241_v62  ;;  %v416_v62 = vld [vmem:[#allocation2 + $0x9b0] sm:$0xff] }
 0x13a   :  { %2779 = vmatpush2.bf16.msra.mxu1 %v4369_v63  ;;  %2739 = vmatprep.subr.bf16.mxu0 %v4234_v0  ;;  %v157_v63 = vld [vmem:[#allocation2 + $0x198] sm:$0xff]  ;;  %v4434_v4 = vcombine.high %v412_v61, %v416_v62 }
 0x13b   :  { %2780 = vmatprep.subr.bf16.mxu1 %v4362_v1  ;;  %v161_v0 = vld [vmem:[#allocation2 + $0x1b8] sm:$0xff]  ;;  %v495_v1 = vrot.slane %v5161_v55, %v494_v51 }
 0x13d   :  { %2740 = vmatpush2.bf16.msra.mxu0 %v4233_v6  ;;  %v4180_v6 = vcombine.high %v157_v63, %v161_v0 }
 0x13e   :  { %2781 = vmatpush2.bf16.msra.mxu1 %v4361_v7  ;;  %2741 = vmatprep.subr.bf16.mxu0 %v4226_v8  ;;  %v404_v7 = vld [vmem:[#allocation2 + $0x950] sm:$0xff] }
 0x13f   :  { %2782 = vmatprep.subr.bf16.mxu1 %v4354_v9  ;;  %v408_v8 = vld [vmem:[#allocation2 + $0x970] sm:$0xff] }
 0x140   :  { %v4425_v31 = vcombine.low %v404_v7, %v408_v8 }
 0x141   :  { %2742 = vmatpush2.bf16.msra.mxu0 %v4225_v14  ;;  %v4433_v14 = vcombine.low %v412_v61, %v416_v62  ;;  %v376_v61 = vld [vmem:[#allocation2 + $0x870] sm:$0xff]  ;;  %v117_v62 = vld [vmem:[#allocation2 + $0x58] sm:$0xff] }
 0x142   :  { %2783 = vmatpush2.bf16.msra.mxu1 %v4353_v15  ;;  %2743 = vmatprep.subr.bf16.mxu0 %v4218_v17  ;;  %v4179_v17 = vcombine.low %v157_v63, %v161_v0  ;;  %v121_v63 = vld [vmem:[#allocation2 + $0x78] sm:$0xff] }
 0x143   :  { %2784 = vmatprep.subr.bf16.mxu1 %v4346_v18  ;;  %v4426_v18 = vcombine.high %v404_v7, %v408_v8  ;;  %v113_v7 = vld [vmem:[#allocation2 + $0x38] sm:$0xff] }
 0x145   :  { %2744 = vmatpush2.bf16.msra.mxu0 %v4217_v53  ;;  %v396_v53 = vld [vmem:[#allocation2 + $0x910] sm:$0xff] }
 0x146   :  { %2785 = vmatpush2.bf16.msra.mxu1 %v4345_v25  ;;  %2745 = vmatprep.subr.bf16.mxu0 %v4210_v26  ;;  %v400_v25 = vld [vmem:[#allocation2 + $0x930] sm:$0xff] }
 0x147   :  { %2786 = vmatprep.subr.bf16.mxu1 %v4338_v27  ;;  %v141_v27 = vld [vmem:[#allocation2 + $0x118] sm:$0xff] }
 0x149   :  { %2746 = vmatpush2.bf16.msra.mxu0 %v4209_v33 }
 0x14a   :  { %2787 = vmatpush2.bf16.msra.mxu1 %v4337_v35  ;;  %2747 = vmatprep.subr.bf16.mxu0 %v4202_v36  ;;  %v4418_v35 = vcombine.high %v396_v53, %v400_v25 }
 0x14b   :  { %2788 = vmatprep.subr.bf16.mxu1 %v4330_v37  ;;  %v4164_v37 = vcombine.high %v141_v27, %v145_v54 }
 0x14d   :  { %2748 = vmatpush2.bf16.msra.mxu0 %v4201_v19  ;;  %v4417_v19 = vcombine.low %v396_v53, %v400_v25  ;;  %v480_v53 = vld [vmem:[#allocation2 + $0xbb0] sm:$0xff]  ;;  %v221_v25 = vld [vmem:[#allocation2 + $0x398] sm:$0xff] }
 0x14e   :  { %2789 = vmatpush2.bf16.msra.mxu1 %v4329_v43  ;;  %2749 = vmatprep.subr.bf16.mxu0 %v4194_v44  ;;  %v4410_v43 = vcombine.high %v388_v38, %v392_v39  ;;  %v4156_v44 = vcombine.high %v133_v40, %v137_v41 }
 0x14f   :  { %2790 = vmatprep.subr.bf16.mxu1 %v4322_v45  ;;  %v380_v45 = vld [vmem:[#allocation2 + $0x890] sm:$0xff] }
 0x150   :  { %v4401_v0 = vcombine.low %v380_v45, %v384_v46 }
 0x151   :  { %2750 = vmatpush2.bf16.msra.mxu0 %v4193_v50  ;;  %v4155_v50 = vcombine.low %v133_v40, %v137_v41  ;;  %v460_v41 = vld [vmem:[#allocation2 + $0xb10] sm:$0xff] }
 0x152   :  { %2791 = vmatpush2.bf16.msra.mxu1 %v4321_v52  ;;  %2801 = vmatprep.subr.bf16.mxu0 %v4442_v56  ;;  %v4402_v52 = vcombine.high %v380_v45, %v384_v46  ;;  %v4148_v56 = vcombine.high %v125_v47, %v129_v48 }
 0x153   :  { %2842 = vmatprep.subr.bf16.mxu1 %v4188_v57  ;;  %v372_v57 = vld [vmem:[#allocation2 + $0x850] sm:$0xff] }
 0x154   :  { %v2507_v9 = vpop.f32.mrf.mxu0  ;;  %2752 = vmatmul.mubr.bf16.vlgmr.msra.gmra.mxu0 %v5127_v16  ;;  %v4393_v8 = vcombine.low %v372_v57, %v376_v61 }
 0x155   :  { %v2508_v12 = vadd.f32 %v2507_v9, %v495_v1  ;;  %v2548_v13 = vpop.f32.mrf.mxu1  ;;  %2793 = vmatmul.mubr.bf16.vlgmr.msra.gmra.mxu1 %v5136_v20  ;;  %2802 = vmatpush1.bf16.msra.mxu0 %v4441_v2  ;;  %v4147_v1 = vcombine.low %v125_v47, %v129_v48  ;;  %v4394_v2 = vcombine.high %v372_v57, %v376_v61  ;;  %v452_v48 = vld [vmem:[#allocation2 + $0xad0] sm:$0xff] }
 0x156   :  { %2843 = vmatpush1.bf16.msra.mxu1 %v4187_v3  ;;  %v2509_v15 = vpop.f32.mrf.mxu0  ;;  %2803 = vmatprep.subr.bf16.mxu0 %v4434_v4  ;;  %v4140_v3 = vcombine.high %v117_v62, %v121_v63  ;;  %v364_v4 = vld [vmem:[#allocation2 + $0x810] sm:$0xff]  ;;  %v4139_v9 = vcombine.low %v117_v62, %v121_v63 }
 0x157   :  { %v5172_v21 = vadd.f32 %v2548_v13, %v2508_v12  ;;  %v2510_v22 = vadd.f32 %v2509_v15, %v499_v5  ;;  %v2550_v23 = vpop.f32.mrf.mxu1  ;;  %2844 = vmatprep.subr.bf16.mxu1 %v4180_v6  ;;  %2833 = vmatprep.mubr.bf16.mxu0 %v5140_v28  ;;  %v368_v5 = vld [vmem:[#allocation2 + $0x830] sm:$0xff]  ;;  %v109_v6 = vld [vmem:[#allocation2 + $0x18] sm:$0xff] }
 0x158   :  { %v2511_v26 = vpop.f32.mrf.mxu0  ;;  %2874 = vmatprep.mubr.bf16.mxu1 %v5117_v58  ;;  %v4163_v58 = vcombine.low %v141_v27, %v145_v54  ;;  %v4386_v10 = vcombine.high %v364_v4, %v368_v5  ;;  %v4132_v11 = vcombine.high %v109_v6, %v113_v7  ;;  %v484_v12 = vld [vmem:[#allocation2 + $0xbd0] sm:$0xff]  ;;  %v233_v15 = vld [vmem:[#allocation2 + $0x3f8] sm:$0xff] }
 0x159   :  { %v5176_v29 = vadd.f32 %v2550_v23, %v2510_v22  ;;  %v2552_v30 = vpop.f32.mrf.mxu1  ;;  %2804 = vmatpush1.bf16.msra.mxu0 %v4433_v14  ;;  %v488_v13 = vld [vmem:[#allocation2 + $0xbf0] sm:$0xff]  ;;  %v229_v14 = vld [vmem:[#allocation2 + $0x3d8] sm:$0xff] }
 0x15a   :  { %2845 = vmatpush1.bf16.msra.mxu1 %v4179_v17  ;;  %v2512_v33 = vpop.f32.mrf.mxu0  ;;  %2805 = vmatprep.subr.bf16.mxu0 %v4426_v18  ;;  %v4385_v17 = vcombine.low %v364_v4, %v368_v5  ;;  %v4131_v18 = vcombine.low %v109_v6, %v113_v7  ;;  %v4506_v22 = vcombine.high %v484_v12, %v488_v13  ;;  %v225_v26 = vld [vmem:[#allocation2 + $0x3b8] sm:$0xff]  ;;  %v444_v63 = vld [vmem:[#allocation2 + $0xa90] sm:$0xff] }
 0x15b   :  { %v2553_v36 = vpop.f32.mrf.mxu1  ;;  %2846 = vmatprep.subr.bf16.mxu1 %v4172_v24  ;;  %v4252_v23 = vcombine.high %v229_v14, %v233_v15  ;;  %v476_v24 = vld [vmem:[#allocation2 + $0xb90] sm:$0xff]  ;;  %v4505_v27 = vcombine.low %v484_v12, %v488_v13  ;;  %v4251_v54 = vcombine.low %v229_v14, %v233_v15  ;;  %v4243_v38 = vcombine.low %v221_v25, %v225_v26 }
 0x15c   :  { %v4498_v30 = vcombine.high %v476_v24, %v480_v53  ;;  %v468_v33 = vld [vmem:[#allocation2 + $0xb50] sm:$0xff]  ;;  %v217_v36 = vld [vmem:[#allocation2 + $0x378] sm:$0xff] }
 0x15d   :  { %2806 = vmatpush1.bf16.msra.mxu0 %v4425_v31  ;;  %v4244_v31 = vcombine.high %v221_v25, %v225_v26  ;;  %v436_v7 = vld [vmem:[#allocation2 + $0xa50] sm:$0xff]  ;;  %v293_v26 = vld [vmem:[#allocation2 + $0x5d8] sm:$0xff] }
 0x15e   :  { %2847 = vmatpush1.bf16.msra.mxu1 %v4171_v34  ;;  %2807 = vmatprep.subr.bf16.mxu0 %v4418_v35  ;;  %v472_v34 = vld [vmem:[#allocation2 + $0xb70] sm:$0xff]  ;;  %v213_v35 = vld [vmem:[#allocation2 + $0x358] sm:$0xff] }
 0x15f   :  { %2848 = vmatprep.subr.bf16.mxu1 %v4164_v37  ;;  %v4497_v37 = vcombine.low %v476_v24, %v480_v53  ;;  %v4490_v39 = vcombine.high %v468_v33, %v472_v34  ;;  %v4236_v40 = vcombine.high %v213_v35, %v217_v36  ;;  %v4235_v45 = vcombine.low %v213_v35, %v217_v36  ;;  %v428_v15 = vld [vmem:[#allocation2 + $0xa10] sm:$0xff]  ;;  %v285_v36 = vld [vmem:[#allocation2 + $0x598] sm:$0xff] }
 0x161   :  { %2808 = vmatpush1.bf16.msra.mxu0 %v4417_v19  ;;  %v464_v19 = vld [vmem:[#allocation2 + $0xb30] sm:$0xff] }
 0x162   :  { %2849 = vmatpush1.bf16.msra.mxu1 %v4163_v58  ;;  %2809 = vmatprep.subr.bf16.mxu0 %v4410_v43  ;;  %v205_v58 = vld [vmem:[#allocation2 + $0x318] sm:$0xff]  ;;  %v4482_v46 = vcombine.high %v460_v41, %v464_v19 }
 0x163   :  { %2850 = vmatprep.subr.bf16.mxu1 %v4156_v44  ;;  %v209_v43 = vld [vmem:[#allocation2 + $0x338] sm:$0xff]  ;;  %v4489_v44 = vcombine.low %v468_v33, %v472_v34 }
 0x164   :  { %v4228_v47 = vcombine.high %v205_v58, %v209_v43  ;;  %v4227_v57 = vcombine.low %v205_v58, %v209_v43  ;;  %v277_v43 = vld [vmem:[#allocation2 + $0x558] sm:$0xff] }
 0x165   :  { %2810 = vmatpush1.bf16.msra.mxu0 %v4409_v49  ;;  %v456_v49 = vld [vmem:[#allocation2 + $0xaf0] sm:$0xff] }
 0x166   :  { %2851 = vmatpush1.bf16.msra.mxu1 %v4155_v50  ;;  %2811 = vmatprep.subr.bf16.mxu0 %v4402_v52  ;;  %v197_v50 = vld [vmem:[#allocation2 + $0x2d8] sm:$0xff]  ;;  %v4474_v61 = vcombine.high %v452_v48, %v456_v49 }
 0x167   :  { %2852 = vmatprep.subr.bf16.mxu1 %v4148_v56  ;;  %v201_v52 = vld [vmem:[#allocation2 + $0x2f8] sm:$0xff]  ;;  %v4481_v56 = vcombine.low %v460_v41, %v464_v19 }
 0x168   :  { %v4220_v62 = vcombine.high %v197_v50, %v201_v52  ;;  %v4219_v4 = vcombine.low %v197_v50, %v201_v52 }
 0x169   :  { %2812 = vmatpush1.bf16.msra.mxu0 %v4401_v0  ;;  %v448_v0 = vld [vmem:[#allocation2 + $0xab0] sm:$0xff] }
 0x16a   :  { %2853 = vmatpush1.bf16.msra.mxu1 %v4147_v1  ;;  %2813 = vmatprep.subr.bf16.mxu0 %v4394_v2  ;;  %v189_v1 = vld [vmem:[#allocation2 + $0x298] sm:$0xff]  ;;  %v4466_v5 = vcombine.high %v444_v63, %v448_v0 }
 0x16b   :  { %2854 = vmatprep.subr.bf16.mxu1 %v4140_v3  ;;  %v193_v2 = vld [vmem:[#allocation2 + $0x2b8] sm:$0xff]  ;;  %v4473_v3 = vcombine.low %v452_v48, %v456_v49 }
 0x16c   :  { %v4212_v6 = vcombine.high %v189_v1, %v193_v2  ;;  %v4211_v12 = vcombine.low %v189_v1, %v193_v2  ;;  %v397_v1 = vld [vmem:[#allocation2 + $0x918] sm:$0xff] }
 0x16d   :  { %2814 = vmatpush1.bf16.msra.mxu0 %v4393_v8  ;;  %v440_v8 = vld [vmem:[#allocation2 + $0xa70] sm:$0xff]  ;;  %v401_v2 = vld [vmem:[#allocation2 + $0x938] sm:$0xff] }
 0x16e   :  { %2855 = vmatpush1.bf16.msra.mxu1 %v4139_v9  ;;  %2815 = vmatprep.subr.bf16.mxu0 %v4386_v10  ;;  %v181_v9 = vld [vmem:[#allocation2 + $0x258] sm:$0xff]  ;;  %v4458_v13 = vcombine.high %v436_v7, %v440_v8 }
 0x16f   :  { %2856 = vmatprep.subr.bf16.mxu1 %v4132_v11  ;;  %v185_v10 = vld [vmem:[#allocation2 + $0x278] sm:$0xff]  ;;  %v4465_v11 = vcombine.low %v444_v63, %v448_v0 }
 0x170   :  { %v4204_v14 = vcombine.high %v181_v9, %v185_v10  ;;  %v4203_v24 = vcombine.low %v181_v9, %v185_v10  ;;  %v269_v63 = vld [vmem:[#allocation2 + $0x518] sm:$0xff] }
 0x171   :  { %2816 = vmatpush1.bf16.msra.mxu0 %v4385_v17  ;;  %v432_v17 = vld [vmem:[#allocation2 + $0xa30] sm:$0xff]  ;;  %v273_v0 = vld [vmem:[#allocation2 + $0x538] sm:$0xff] }
 0x172   :  { %2857 = vmatpush1.bf16.msra.mxu1 %v4131_v18  ;;  %2817 = vmatprep.subr.bf16.mxu0 %v4506_v22  ;;  %v173_v18 = vld [vmem:[#allocation2 + $0x218] sm:$0xff]  ;;  %v4450_v53 = vcombine.high %v428_v15, %v432_v17 }
 0x173   :  { %2858 = vmatprep.subr.bf16.mxu1 %v4252_v23  ;;  %v177_v22 = vld [vmem:[#allocation2 + $0x238] sm:$0xff]  ;;  %v4457_v23 = vcombine.low %v436_v7, %v440_v8  ;;  %v4420_v8 = vcombine.high %v397_v1, %v401_v2 }
 0x174   :  { %v4196_v25 = vcombine.high %v173_v18, %v177_v22  ;;  %v4195_v33 = vcombine.low %v173_v18, %v177_v22  ;;  %v261_v9 = vld [vmem:[#allocation2 + $0x4d8] sm:$0xff] }
 0x175   :  { %2818 = vmatpush2.bf16.msra.mxu0 %v4505_v27  ;;  %v297_v27 = vld [vmem:[#allocation2 + $0x5f8] sm:$0xff] }
 0x176   :  { %2859 = vmatpush2.bf16.msra.mxu1 %v4251_v54  ;;  %2819 = vmatprep.subr.bf16.mxu0 %v4498_v30  ;;  %v421_v54 = vld [vmem:[#allocation2 + $0x9d8] sm:$0xff]  ;;  %v4316_v34 = vcombine.high %v293_v26, %v297_v27 }
 0x177   :  { %2860 = vmatprep.subr.bf16.mxu1 %v4244_v31  ;;  %v425_v30 = vld [vmem:[#allocation2 + $0x9f8] sm:$0xff]  ;;  %v4449_v31 = vcombine.low %v428_v15, %v432_v17 }
 0x178   :  { %v4444_v35 = vcombine.high %v421_v54, %v425_v30  ;;  %v4443_v41 = vcombine.low %v421_v54, %v425_v30  ;;  %v265_v10 = vld [vmem:[#allocation2 + $0x4f8] sm:$0xff] }
 0x179   :  { %2820 = vmatpush2.bf16.msra.mxu0 %v4497_v37  ;;  %v289_v37 = vld [vmem:[#allocation2 + $0x5b8] sm:$0xff] }
 0x17a   :  { %2861 = vmatpush2.bf16.msra.mxu1 %v4243_v38  ;;  %2821 = vmatprep.subr.bf16.mxu0 %v4490_v39  ;;  %v413_v38 = vld [vmem:[#allocation2 + $0x998] sm:$0xff]  ;;  %v4308_v19 = vcombine.high %v285_v36, %v289_v37  ;;  %v4307_v50 = vcombine.low %v285_v36, %v289_v37 }
 0x17b   :  { %2862 = vmatprep.subr.bf16.mxu1 %v4236_v40  ;;  %v417_v39 = vld [vmem:[#allocation2 + $0x9b8] sm:$0xff]  ;;  %v4315_v40 = vcombine.low %v293_v26, %v297_v27 }
 0x17c   :  { %v4436_v58 = vcombine.high %v413_v38, %v417_v39  ;;  %v253_v15 = vld [vmem:[#allocation2 + $0x498] sm:$0xff] }
 0x17d   :  { %2822 = vmatpush2.bf16.msra.mxu0 %v4489_v44  ;;  %v281_v44 = vld [vmem:[#allocation2 + $0x578] sm:$0xff] }
 0x17e   :  { %2863 = vmatpush2.bf16.msra.mxu1 %v4235_v45  ;;  %2823 = vmatprep.subr.bf16.mxu0 %v4482_v46  ;;  %v405_v46 = vld [vmem:[#allocation2 + $0x958] sm:$0xff] }
 0x17f   :  { %2864 = vmatprep.subr.bf16.mxu1 %v4228_v47  ;;  %v409_v47 = vld [vmem:[#allocation2 + $0x978] sm:$0xff] }
 0x180   :  { %v257_v17 = vld [vmem:[#allocation2 + $0x4b8] sm:$0xff] }
 0x181   :  { %2824 = vmatpush2.bf16.msra.mxu0 %v4481_v56  ;;  %v4435_v56 = vcombine.low %v413_v38, %v417_v39  ;;  %v381_v18 = vld [vmem:[#allocation2 + $0x898] sm:$0xff] }
 0x182   :  { %2865 = vmatpush2.bf16.msra.mxu1 %v4227_v57  ;;  %2825 = vmatprep.subr.bf16.mxu0 %v4474_v61  ;;  %v4300_v57 = vcombine.high %v277_v43, %v281_v44  ;;  %v385_v22 = vld [vmem:[#allocation2 + $0x8b8] sm:$0xff] }
 0x183   :  { %2866 = vmatprep.subr.bf16.mxu1 %v4220_v62  ;;  %v4428_v62 = vcombine.high %v405_v46, %v409_v47  ;;  %v245_v26 = vld [vmem:[#allocation2 + $0x458] sm:$0xff] }
 0x184   :  { %v249_v27 = vld [vmem:[#allocation2 + $0x478] sm:$0xff] }
 0x185   :  { %2826 = vmatpush2.bf16.msra.mxu0 %v4473_v3  ;;  %v4299_v3 = vcombine.low %v277_v43, %v281_v44  ;;  %v373_v54 = vld [vmem:[#allocation2 + $0x858] sm:$0xff] }
 0x186   :  { %2867 = vmatpush2.bf16.msra.mxu1 %v4219_v4  ;;  %2827 = vmatprep.subr.bf16.mxu0 %v4466_v5  ;;  %v4427_v5 = vcombine.low %v405_v46, %v409_v47  ;;  %v377_v30 = vld [vmem:[#allocation2 + $0x878] sm:$0xff] }
 0x187   :  { %2868 = vmatprep.subr.bf16.mxu1 %v4212_v6  ;;  %v4292_v6 = vcombine.high %v269_v63, %v273_v0  ;;  %v237_v36 = vld [vmem:[#allocation2 + $0x418] sm:$0xff] }
 0x188   :  { %v241_v37 = vld [vmem:[#allocation2 + $0x438] sm:$0xff] }
 0x189   :  { %2828 = vmatpush2.bf16.msra.mxu0 %v4465_v11  ;;  %v389_v11 = vld [vmem:[#allocation2 + $0x8d8] sm:$0xff]  ;;  %v4259_v47 = vcombine.low %v237_v36, %v241_v37 }
 0x18a   :  { %2869 = vmatpush2.bf16.msra.mxu1 %v4211_v12  ;;  %2829 = vmatprep.subr.bf16.mxu0 %v4458_v13  ;;  %v4291_v12 = vcombine.low %v269_v63, %v273_v0  ;;  %v4284_v13 = vcombine.high %v261_v9, %v265_v10  ;;  %v365_v38 = vld [vmem:[#allocation2 + $0x818] sm:$0xff] }
 0x18b   :  { %2870 = vmatprep.subr.bf16.mxu1 %v4204_v14  ;;  %v369_v39 = vld [vmem:[#allocation2 + $0x838] sm:$0xff] }
 0x18c   :  { %v357_v43 = vld [vmem:[#allocation2 + $0x7d8] sm:$0xff] }
 0x18d   :  { %2830 = vmatpush2.bf16.msra.mxu0 %v4457_v23  ;;  %v4283_v23 = vcombine.low %v261_v9, %v265_v10  ;;  %v361_v44 = vld [vmem:[#allocation2 + $0x7f8] sm:$0xff] }
 0x18e   :  { %2871 = vmatpush2.bf16.msra.mxu1 %v4203_v24  ;;  %2831 = vmatprep.subr.bf16.mxu0 %v4450_v53  ;;  %v4276_v53 = vcombine.high %v253_v15, %v257_v17  ;;  %v489_v46 = vld [vmem:[#allocation2 + $0xbf8] sm:$0xff] }
 0x18f   :  { %2872 = vmatprep.subr.bf16.mxu1 %v4196_v25  ;;  %v4404_v25 = vcombine.high %v381_v18, %v385_v22  ;;  %v353_v63 = vld [vmem:[#allocation2 + $0x7b8] sm:$0xff] }
 0x190   :  { %v477_v0 = vld [vmem:[#allocation2 + $0xb98] sm:$0xff] }
 0x191   :  { %2832 = vmatpush2.bf16.msra.mxu0 %v4449_v31  ;;  %v4275_v31 = vcombine.low %v253_v15, %v257_v17 }
 0x192   :  { %2873 = vmatpush2.bf16.msra.mxu1 %v4195_v33  ;;  %2883 = vmatprep.subr.bf16.mxu0 %v4316_v34  ;;  %v4403_v33 = vcombine.low %v381_v18, %v385_v22  ;;  %v4268_v34 = vcombine.high %v245_v26, %v249_v27  ;;  %v325_v22 = vld [vmem:[#allocation2 + $0x6d8] sm:$0xff] }
 0x193   :  { %2924 = vmatprep.subr.bf16.mxu1 %v4444_v35  ;;  %v4396_v35 = vcombine.high %v373_v54, %v377_v30 }
 0x194   :  { %v2589_v45 = vpop.f32.mrf.mxu0  ;;  %2834 = vmatmul.mubr.bf16.vlgmr.msra.gmra.mxu0 %v5148_v32 }
 0x195   :  { %v5180_v48 = vadd.f32 %v2589_v45, %v5172_v21  ;;  %v5182_v49 = vpop.f32.mrf.mxu1  ;;  %2875 = vmatmul.mubr.bf16.vlgmr.msra.gmra.mxu1 %v5127_v16  ;;  %2884 = vmatpush1.bf16.msra.mxu0 %v4315_v40  ;;  %v4267_v40 = vcombine.low %v245_v26, %v249_v27  ;;  %v485_v45 = vld [vmem:[#allocation2 + $0xbd8] sm:$0xff] }
 0x196   :  { %2925 = vmatpush1.bf16.msra.mxu1 %v4443_v41  ;;  %v5185_v52 = vpop.f32.mrf.mxu0  ;;  %2885 = vmatprep.subr.bf16.mxu0 %v4308_v19  ;;  %v4395_v41 = vcombine.low %v373_v54, %v377_v30  ;;  %v4260_v19 = vcombine.high %v237_v36, %v241_v37  ;;  %v317_v30 = vld [vmem:[#allocation2 + $0x698] sm:$0xff] }
 0x197   :  { %v5187_v61 = vpop.f32.mrf.mxu1  ;;  %2926 = vmatprep.subr.bf16.mxu1 %v4436_v58  ;;  %2915 = vmatprep.mubr.bf16.mxu0 %v5121_v59  ;;  %v393_v59 = vld [vmem:[#allocation2 + $0x8f8] sm:$0xff]  ;;  %v4388_v58 = vcombine.high %v365_v38, %v369_v39 }
 0x198   :  { %v2593_v21 = vpop.f32.mrf.mxu0  ;;  %2956 = vmatprep.mubr.bf16.mxu1 %v5140_v28  ;;  %v4419_v28 = vcombine.low %v397_v1, %v401_v2  ;;  %v4412_v14 = vcombine.high %v389_v11, %v393_v59  ;;  %v4411_v24 = vcombine.low %v389_v11, %v393_v59  ;;  %v4379_v1 = vcombine.low %v357_v43, %v361_v44  ;;  %v333_v59 = vld [vmem:[#allocation2 + $0x718] sm:$0xff] }
 0x199   :  { %v2634_v16 = vpop.f32.mrf.mxu1  ;;  %2886 = vmatpush1.bf16.msra.mxu0 %v4307_v50  ;;  %v4387_v50 = vcombine.low %v365_v38, %v369_v39  ;;  %v481_v21 = vld [vmem:[#allocation2 + $0xbb8] sm:$0xff]  ;;  %v4507_v2 = vcombine.low %v485_v45, %v489_v46 }
 0x19a   :  { %2927 = vmatpush1.bf16.msra.mxu1 %v4435_v56  ;;  %v2594_v4 = vpop.f32.mrf.mxu0  ;;  %2887 = vmatprep.subr.bf16.mxu0 %v4300_v57  ;;  %v4380_v56 = vcombine.high %v357_v43, %v361_v44  ;;  %v4508_v57 = vcombine.high %v485_v45, %v489_v46  ;;  %v4499_v9 = vcombine.low %v477_v0, %v481_v21  ;;  %v309_v39 = vld [vmem:[#allocation2 + $0x658] sm:$0xff] }
 0x19b   :  { %v2635_v7 = vpop.f32.mrf.mxu1  ;;  %2928 = vmatprep.subr.bf16.mxu1 %v4428_v62  ;;  %v349_v62 = vld [vmem:[#allocation2 + $0x798] sm:$0xff] }
 0x19c   :  { %v4372_v16 = vcombine.high %v349_v62, %v353_v63  ;;  %v341_v4 = vld [vmem:[#allocation2 + $0x758] sm:$0xff] }
 0x19d   :  { %2888 = vmatpush1.bf16.msra.mxu0 %v4299_v3  ;;  %v4500_v3 = vcombine.high %v477_v0, %v481_v21  ;;  %v473_v7 = vld [vmem:[#allocation2 + $0xb78] sm:$0xff]  ;;  %v2592_v21 = vadd.f32 %v5185_v52, %v5176_v29  ;;  %v4702_v29 = vld [vmem:[#allocation6 + $0x64] ss:$8 sps:$4 sm:$0xff]  }
 0x19e   :  { %2929 = vmatpush1.bf16.msra.mxu1 %v4427_v5  ;;  %2889 = vmatprep.subr.bf16.mxu0 %v4292_v6  ;;  %v345_v5 = vld [vmem:[#allocation2 + $0x778] sm:$0xff]  ;;  %v4705_v52 = vld [vmem:[#allocation6 + $0x164] ss:$8 sps:$4 sm:$0xff]  }
 0x19f   :  { %2930 = vmatprep.subr.bf16.mxu1 %v4420_v8  ;;  %v469_v6 = vld [vmem:[#allocation2 + $0xb58] sm:$0xff]  ;;  %v4371_v8 = vcombine.low %v349_v62, %v353_v63  ;;  %v4364_v10 = vcombine.high %v341_v4, %v345_v5 }
 0x1a0   :  { %v4492_v11 = vcombine.high %v469_v6, %v473_v7  ;;  %v4491_v15 = vcombine.low %v469_v6, %v473_v7  ;;  %v301_v46 = vld [vmem:[#allocation2 + $0x618] sm:$0xff] }
 0x1a1   :  { %2890 = vmatpush1.bf16.msra.mxu0 %v4291_v12  ;;  %v337_v12 = vld [vmem:[#allocation2 + $0x738] sm:$0xff] }
 0x1a2   :  { %2931 = vmatpush1.bf16.msra.mxu1 %v4419_v28  ;;  %2891 = vmatprep.subr.bf16.mxu0 %v4284_v13  ;;  %v461_v28 = vld [vmem:[#allocation2 + $0xb18] sm:$0xff]  ;;  %v4356_v17 = vcombine.high %v333_v59, %v337_v12 }
 0x1a3   :  { %2932 = vmatprep.subr.bf16.mxu1 %v4412_v14  ;;  %v465_v13 = vld [vmem:[#allocation2 + $0xb38] sm:$0xff]  ;;  %v4363_v14 = vcombine.low %v341_v4, %v345_v5  ;;  %v2966_v5 = vmax.f32 %v2592_v21, 0.0  ;;  %v4751_v21 = vld [vmem:[#allocation6 + $0x1e0] ss:$8 sps:$4 sm:$0xff]  }
 0x1a4   :  { %v4484_v18 = vcombine.high %v461_v28, %v465_v13  ;;  %v4483_v26 = vcombine.low %v461_v28, %v465_v13  ;;  %v4699_v4 = vld [vmem:[#allocation6 + $0x174] ss:$8 sps:$4 sm:$0xff]   ;;  %v4694_v7 = vld [vmem:[#allocation6 + $0x70] ss:$8 sps:$4 sm:$0xff]   ;;  %v4703_v28 = vld [vmem:[#allocation6 + $0x160] ss:$8 sps:$4 sm:$0xff]  }
 0x1a5   :  { %2892 = vmatpush1.bf16.msra.mxu0 %v4283_v23  ;;  %v329_v23 = vld [vmem:[#allocation2 + $0x6f8] sm:$0xff] }
 0x1a6   :  { %2933 = vmatpush1.bf16.msra.mxu1 %v4411_v24  ;;  %2893 = vmatprep.subr.bf16.mxu0 %v4276_v53  ;;  %v453_v24 = vld [vmem:[#allocation2 + $0xad8] sm:$0xff]  ;;  %v4348_v27 = vcombine.high %v325_v22, %v329_v23 }
 0x1a7   :  { %2934 = vmatprep.subr.bf16.mxu1 %v4404_v25  ;;  %v457_v53 = vld [vmem:[#allocation2 + $0xaf8] sm:$0xff]  ;;  %v4355_v25 = vcombine.low %v333_v59, %v337_v12 }
 0x1a8   :  { %v4476_v54 = vcombine.high %v453_v24, %v457_v53  ;;  %v4475_v36 = vcombine.low %v453_v24, %v457_v53  ;;  %v4708_v13 = vld [vmem:[#allocation6 + $0x54] ss:$8 sps:$4 sm:$0xff]   ;;  %v4714_v24 = vld [vmem:[#allocation6 + $0x44] ss:$8 sps:$4 sm:$0xff]  }
 0x1a9   :  { %2894 = vmatpush1.bf16.msra.mxu0 %v4275_v31  ;;  %v321_v31 = vld [vmem:[#allocation2 + $0x6b8] sm:$0xff] }
 0x1aa   :  { %2935 = vmatpush1.bf16.msra.mxu1 %v4403_v33  ;;  %2895 = vmatprep.subr.bf16.mxu0 %v4268_v34  ;;  %v445_v33 = vld [vmem:[#allocation2 + $0xa98] sm:$0xff]  ;;  %v4340_v37 = vcombine.high %v317_v30, %v321_v31 }
 0x1ab   :  { %2936 = vmatprep.subr.bf16.mxu1 %v4396_v35  ;;  %v449_v34 = vld [vmem:[#allocation2 + $0xab8] sm:$0xff]  ;;  %v4347_v35 = vcombine.low %v325_v22, %v329_v23 }
 0x1ac   :  { %v4468_v38 = vcombine.high %v445_v33, %v449_v34  ;;  %v4467_v43 = vcombine.low %v445_v33, %v449_v34  ;;  %v4723_v33 = vld [vmem:[#allocation6 + $0x134] ss:$8 sps:$4 sm:$0xff]   ;;  %v4718_v34 = vld [vmem:[#allocation6 + $0x30] ss:$8 sps:$4 sm:$0xff]  }
 0x1ad   :  { %2896 = vmatpush1.bf16.msra.mxu0 %v4267_v40  ;;  %v313_v40 = vld [vmem:[#allocation2 + $0x678] sm:$0xff] }
 0x1ae   :  { %2937 = vmatpush1.bf16.msra.mxu1 %v4395_v41  ;;  %2897 = vmatprep.subr.bf16.mxu0 %v4260_v19  ;;  %v437_v41 = vld [vmem:[#allocation2 + $0xa58] sm:$0xff]  ;;  %v4332_v44 = vcombine.high %v309_v39, %v313_v40 }
 0x1af   :  { %2938 = vmatprep.subr.bf16.mxu1 %v4388_v58  ;;  %v441_v19 = vld [vmem:[#allocation2 + $0xa78] sm:$0xff]  ;;  %v4339_v58 = vcombine.low %v317_v30, %v321_v31  ;;  %v4715_v30 = vld [vmem:[#allocation6 + $0x140] ss:$8 sps:$4 sm:$0xff]  }
 0x1b0   :  { %v4460_v45 = vcombine.high %v437_v41, %v441_v19  ;;  %v4459_v62 = vcombine.low %v437_v41, %v441_v19  ;;  %v4720_v31 = vld [vmem:[#allocation6 + $0x34] ss:$8 sps:$4 sm:$0xff]   ;;  %v4730_v19 = vld [vmem:[#allocation6 + $0x10] ss:$8 sps:$4 sm:$0xff]  }
 0x1b1   :  { %2898 = vmatpush1.bf16.msra.mxu0 %v4259_v47  ;;  %v305_v47 = vld [vmem:[#allocation2 + $0x638] sm:$0xff] }
 0x1b2   :  { %2939 = vmatpush1.bf16.msra.mxu1 %v4387_v50  ;;  %2899 = vmatprep.subr.bf16.mxu0 %v4380_v56  ;;  %v429_v50 = vld [vmem:[#allocation2 + $0xa18] sm:$0xff]  ;;  %v4324_v63 = vcombine.high %v301_v46, %v305_v47 }
 0x1b3   :  { %2940 = vmatprep.subr.bf16.mxu1 %v4508_v57  ;;  %v433_v56 = vld [vmem:[#allocation2 + $0xa38] sm:$0xff]  ;;  %v4331_v57 = vcombine.low %v309_v39, %v313_v40  ;;  %v4727_v39 = vld [vmem:[#allocation6 + $0x120] ss:$8 sps:$4 sm:$0xff]  }
 0x1b4   :  { %v4452_v0 = vcombine.high %v429_v50, %v433_v56  ;;  %v4732_v40 = vld [vmem:[#allocation6 + $0x14] ss:$8 sps:$4 sm:$0xff]  }
 0x1b5   :  { %2900 = vmatpush2.bf16.msra.mxu0 %v4379_v1  ;;  %v506_v1 = vsub.s32 3, %v5158_v42  ;;  %v4735_v41 = vld [vmem:[#allocation6 + $0x114] ss:$8 sps:$4 sm:$0xff]  }
 0x1b6   :  { %2941 = vmatpush2.bf16.msra.mxu1 %v4507_v2  ;;  %2901 = vmatprep.subr.bf16.mxu0 %v4372_v16  ;;  %v4323_v2 = vcombine.low %v301_v46, %v305_v47  ;;  %v4451_v16 = vcombine.low %v429_v50, %v433_v56  ;;  %v4739_v46 = vld [vmem:[#allocation6 + $0x100] ss:$8 sps:$4 sm:$0xff]   ;;  %v4744_v47 = vld [vmem:[#allocation6 + $0xf4] ss:$8 sps:$4 sm:$0xff]   ;;  %v4742_v56 = vld [vmem:[#allocation6 + $0xf0] ss:$8 sps:$4 sm:$0xff]  }
 0x1b7   :  { %2942 = vmatprep.subr.bf16.mxu1 %v4500_v3  ;;  %v4696_v3 = vld [vmem:[#allocation6 + $0x74] ss:$8 sps:$4 sm:$0xff]   ;;  %v507_v6 = vrot.slane %v5161_v55, %v506_v1  ;;  %v4700_v55 = vld [vmem:[#allocation6 + $0x60] ss:$8 sps:$4 sm:$0xff]  }
 0x1b8   :  { %v4747_v50 = vld [vmem:[#allocation6 + $0x1f4] ss:$8 sps:$4 sm:$0xff]  }
 0x1b9   :  { %2902 = vmatpush2.bf16.msra.mxu0 %v4371_v8  ;;  %v4697_v8 = vld [vmem:[#allocation6 + $0x170] ss:$8 sps:$4 sm:$0xff]   ;;  %v4756_v1 = vld [vmem:[#allocation6 + $0xd4] ss:$8 sps:$4 sm:$0xff]  }
 0x1ba   :  { %2943 = vmatpush2.bf16.msra.mxu1 %v4499_v9  ;;  %2903 = vmatprep.subr.bf16.mxu0 %v4364_v10  ;;  %v2974_v9 = vpack.c.bf16 %v2966_v5, %v2966_v5  ;;  %v4765_v5 = vld [vmem:[#allocation6 + $0x1c4] ss:$8 sps:$4 sm:$0xff]  }
 0x1bb   :  { %2944 = vmatprep.subr.bf16.mxu1 %v4492_v11  ;;  %v2633_v11 = vadd.f32 %v5187_v61, %v507_v6  ;;  %v4706_v61 = vld [vmem:[#allocation6 + $0x50] ss:$8 sps:$4 sm:$0xff]   ;;  %v502_v6 = vsub.s32 2, %v5158_v42 }
 0x1bd   :  { %2904 = vmatpush2.bf16.msra.mxu0 %v4363_v14 }
 0x1be   :  { %2945 = vmatpush2.bf16.msra.mxu1 %v4491_v15  ;;  %2905 = vmatprep.subr.bf16.mxu0 %v4356_v17  ;;  %v4711_v17 = vld [vmem:[#allocation6 + $0x154] ss:$8 sps:$4 sm:$0xff]  }
 0x1bf   :  { %2946 = vmatprep.subr.bf16.mxu1 %v4484_v18 }
 0x1c1   :  { %2906 = vmatpush2.bf16.msra.mxu0 %v4355_v25 }
 0x1c2   :  { %2947 = vmatpush2.bf16.msra.mxu1 %v4483_v26  ;;  %2907 = vmatprep.subr.bf16.mxu0 %v4348_v27  ;;  %v4717_v26 = vld [vmem:[#allocation6 + $0x144] ss:$8 sps:$4 sm:$0xff]  }
 0x1c3   :  { %2948 = vmatprep.subr.bf16.mxu1 %v4476_v54  ;;  %v4712_v54 = vld [vmem:[#allocation6 + $0x40] ss:$8 sps:$4 sm:$0xff]  }
 0x1c5   :  { %2908 = vmatpush2.bf16.msra.mxu0 %v4347_v35  ;;  %v4721_v35 = vld [vmem:[#allocation6 + $0x130] ss:$8 sps:$4 sm:$0xff]  }
 0x1c6   :  { %2949 = vmatpush2.bf16.msra.mxu1 %v4475_v36  ;;  %2909 = vmatprep.subr.bf16.mxu0 %v4340_v37  ;;  %v4726_v36 = vld [vmem:[#allocation6 + $0x24] ss:$8 sps:$4 sm:$0xff]  }
 0x1c7   :  { %2950 = vmatprep.subr.bf16.mxu1 %v4468_v38  ;;  %v4729_v37 = vld [vmem:[#allocation6 + $0x124] ss:$8 sps:$4 sm:$0xff]   ;;  %v4724_v38 = vld [vmem:[#allocation6 + $0x20] ss:$8 sps:$4 sm:$0xff]  }
 0x1c9   :  { %2910 = vmatpush2.bf16.msra.mxu0 %v4339_v58  ;;  %v4733_v58 = vld [vmem:[#allocation6 + $0x110] ss:$8 sps:$4 sm:$0xff]  }
 0x1ca   :  { %2951 = vmatpush2.bf16.msra.mxu1 %v4467_v43  ;;  %2911 = vmatprep.subr.bf16.mxu0 %v4332_v44  ;;  %v4738_v43 = vld [vmem:[#allocation6 + $0x4] ss:$8 sps:$4 sm:$0xff]  }
 0x1cb   :  { %2952 = vmatprep.subr.bf16.mxu1 %v4460_v45  ;;  %v4741_v44 = vld [vmem:[#allocation6 + $0x104] ss:$8 sps:$4 sm:$0xff]   ;;  %v4736_v45 = vld [vmem:[#allocation6] ss:$8 sps:$4 sm:$0xff]  }
 0x1cd   :  { %2912 = vmatpush2.bf16.msra.mxu0 %v4331_v57  ;;  %v4745_v57 = vld [vmem:[#allocation6 + $0x1f0] ss:$8 sps:$4 sm:$0xff]  }
 0x1ce   :  { %2953 = vmatpush2.bf16.msra.mxu1 %v4459_v62  ;;  %2913 = vmatprep.subr.bf16.mxu0 %v4324_v63  ;;  %v4750_v62 = vld [vmem:[#allocation6 + $0xe4] ss:$8 sps:$4 sm:$0xff]  }
 0x1cf   :  { %2954 = vmatprep.subr.bf16.mxu1 %v4452_v0  ;;  %v4753_v63 = vld [vmem:[#allocation6 + $0x1e4] ss:$8 sps:$4 sm:$0xff]   ;;  %v4748_v0 = vld [vmem:[#allocation6 + $0xe0] ss:$8 sps:$4 sm:$0xff]  }
 0x1d1   :  { %2914 = vmatpush2.bf16.msra.mxu0 %v4323_v2  ;;  %v4759_v2 = vld [vmem:[#allocation6 + $0x1d4] ss:$8 sps:$4 sm:$0xff]  }
 0x1d2   :  { %2955 = vmatpush2.bf16.msra.mxu1 %v4451_v16  ;;  %3761 = vmatprep.subr.bf16.mxu0 %v4696_v3  ;;  %v4754_v16 = vld [vmem:[#allocation6 + $0xd0] ss:$8 sps:$4 sm:$0xff]  }
 0x1d3   :  { %3802 = vmatprep.subr.bf16.mxu1 %v4699_v4  ;;  %v4757_v3 = vld [vmem:[#allocation6 + $0x1d0] ss:$8 sps:$4 sm:$0xff]   ;;  %v4762_v4 = vld [vmem:[#allocation6 + $0xc4] ss:$8 sps:$4 sm:$0xff]  }
 0x1d4   :  { %v5195_v10 = vpop.f32.mrf.mxu0  ;;  %2916 = vmatmul.mubr.bf16.vlgmr.msra.gmra.mxu0 %v5136_v20 }
 0x1d5   :  { %v5199_v59 = vpop.f32.mrf.mxu1  ;;  %2957 = vmatmul.mubr.bf16.vlgmr.msra.gmra.mxu1 %v5148_v32  ;;  %3762 = vmatpush1.bf16.msra.mxu0 %v4694_v7  ;;  %v4709_v32 = vld [vmem:[#allocation6 + $0x150] ss:$8 sps:$4 sm:$0xff]   ;;  %v4760_v7 = vld [vmem:[#allocation6 + $0xc0] ss:$8 sps:$4 sm:$0xff]  }
 0x1d6   :  { %3793 = vmatprep.mubr.bf16.mxu0 %v2974_v9  ;;  %3803 = vmatpush1.bf16.msra.mxu1 %v4697_v8  ;;  %v2673_v12 = vpop.f32.mrf.mxu0  ;;  %v4763_v8 = vld [vmem:[#allocation6 + $0x1c0] ss:$8 sps:$4 sm:$0xff]   ;;  %v5203_v9 = vld [vmem:[#allocation4] sm:$0xff] }
 0x1d7   :  { %v2674_v14 = vadd.f32 %v2673_v12, %v2633_v11  ;;  %v2714_v15 = vpop.f32.mrf.mxu1  ;;  %3763 = vmatprep.subr.bf16.mxu0 %v4702_v29  ;;  %3804 = vmatprep.subr.bf16.mxu1 %v4705_v52  ;;  %v4768_v29 = vld [vmem:[#allocation6 + $0xb4] ss:$8 sps:$4 sm:$0xff]   ;;  %v503_v11 = vrot.slane %v5203_v9, %v502_v6  ;;  %v4769_v12 = vld [vmem:[#allocation6 + $0x1b0] ss:$8 sps:$4 sm:$0xff]  }
 0x1d8   :  { %v2675_v18 = vpop.f32.mrf.mxu0  ;;  %v4771_v52 = vld [vmem:[#allocation6 + $0x1b4] ss:$8 sps:$4 sm:$0xff]  }
 0x1d9   :  { %v2715_v20 = vadd.f32 %v2714_v15, %v2674_v14  ;;  %v2716_v22 = vpop.f32.mrf.mxu1  ;;  %3764 = vmatpush1.bf16.msra.mxu0 %v4700_v55  ;;  %v4766_v55 = vld [vmem:[#allocation6 + $0xb0] ss:$8 sps:$4 sm:$0xff]   ;;  %v2631_v14 = vadd.f32 %v5182_v49, %v503_v11  ;;  %v4772_v15 = vld [vmem:[#allocation6 + $0xa0] ss:$8 sps:$4 sm:$0xff]   ;;  %v4780_v18 = vld [vmem:[#allocation6 + $0x94] ss:$8 sps:$4 sm:$0xff]  }
 0x1da   :  { %3805 = vmatpush1.bf16.msra.mxu1 %v4703_v28  ;;  %v2676_v23 = vpop.f32.mrf.mxu0  ;;  %3765 = vmatprep.subr.bf16.mxu0 %v4708_v13  ;;  %v4774_v28 = vld [vmem:[#allocation6 + $0xa4] ss:$8 sps:$4 sm:$0xff]   ;;  %v4783_v22 = vld [vmem:[#allocation6 + $0x194] ss:$8 sps:$4 sm:$0xff]   ;;  %v4811_v11 = vld [vmem:[#allocation6 + $0x200] ss:$8 sps:$4 sm:$0xff]  }
 0x1db   :  { %v2968_v53 = vmax.f32 %v2715_v20, 0.0  ;;  %v2717_v25 = vpop.f32.mrf.mxu1  ;;  %3806 = vmatprep.subr.bf16.mxu1 %v4711_v17  ;;  %v4777_v13 = vld [vmem:[#allocation6 + $0x1a4] ss:$8 sps:$4 sm:$0xff]   ;;  %v4775_v17 = vld [vmem:[#allocation6 + $0x1a0] ss:$8 sps:$4 sm:$0xff]   ;;  %v2672_v20 = vadd.f32 %v5195_v10, %v2631_v14 }
 0x1dc   :  { %v4781_v23 = vld [vmem:[#allocation6 + $0x190] ss:$8 sps:$4 sm:$0xff]   ;;  %v4789_v49 = vld [vmem:[#allocation6 + $0x184] ss:$8 sps:$4 sm:$0xff]   ;;  %v2965_v25 = vmax.f32 %v5180_v48, 0.0 }
 0x1dd   :  { %v2976_v27 = vpack.c.bf16 %v2968_v53, %v2968_v53  ;;  %3766 = vmatpush1.bf16.msra.mxu0 %v4706_v61  ;;  %v4778_v61 = vld [vmem:[#allocation6 + $0x90] ss:$8 sps:$4 sm:$0xff]   ;;  %v4784_v53 = vld [vmem:[#allocation6 + $0x80] ss:$8 sps:$4 sm:$0xff]   ;;  %v4792_v10 = vld [vmem:[#allocation6 + $0x274] ss:$8 sps:$4 sm:$0xff]  }
 0x1de   :  { %3807 = vmatpush1.bf16.msra.mxu1 %v4709_v32  ;;  %3767 = vmatprep.subr.bf16.mxu0 %v4714_v24  ;;  %v4786_v32 = vld [vmem:[#allocation6 + $0x84] ss:$8 sps:$4 sm:$0xff]   ;;  %v2713_v24 = vadd.f32 %v5199_v59, %v2672_v20  ;;  %v4838_v59 = vld [vmem:[#allocation6 + $0x370] ss:$8 sps:$4 sm:$0xff]   ;;  %v4858_v6 = vld [vmem:[#allocation6 + $0x314] ss:$8 sps:$4 sm:$0xff]  }
 0x1df   :  { %3834 = vmatprep.mubr.bf16.mxu1 %v2976_v27  ;;  %3808 = vmatprep.subr.bf16.mxu1 %v4717_v26  ;;  %v4787_v26 = vld [vmem:[#allocation6 + $0x180] ss:$8 sps:$4 sm:$0xff]   ;;  %v4819_v14 = vld [vmem:[#allocation6 + $0x2e4] ss:$8 sps:$4 sm:$0xff]   ;;  %v4822_v20 = vld [vmem:[#allocation6 + $0x2d4] ss:$8 sps:$4 sm:$0xff]  }
 0x1e0   :  { %v2967_v27 = vmax.f32 %v2713_v24, 0.0  ;;  %v4868_v24 = vld [vmem:[#allocation6 + $0x3d0] ss:$8 sps:$4 sm:$0xff]  }
 0x1e1   :  { %3768 = vmatpush1.bf16.msra.mxu0 %v4712_v54  ;;  %v4840_v54 = vld [vmem:[#allocation6 + $0x374] ss:$8 sps:$4 sm:$0xff]  }
 0x1e2   :  { %3809 = vmatpush1.bf16.msra.mxu1 %v4715_v30  ;;  %3769 = vmatprep.subr.bf16.mxu0 %v4720_v31  ;;  %v4790_v30 = vld [vmem:[#allocation6 + $0x270] ss:$8 sps:$4 sm:$0xff]   ;;  %v2973_v31 = vpack.c.bf16 %v2965_v25, %v2965_v25  ;;  %v4828_v25 = vld [vmem:[#allocation6 + $0x2b4] ss:$8 sps:$4 sm:$0xff]  }
 0x1e3   :  { %3810 = vmatprep.subr.bf16.mxu1 %v4723_v33  ;;  %v4795_v33 = vld [vmem:[#allocation6 + $0x264] ss:$8 sps:$4 sm:$0xff]  }
 0x1e5   :  { %3770 = vmatpush1.bf16.msra.mxu0 %v4718_v34  ;;  %v2975_v34 = vpack.c.bf16 %v2967_v27, %v2967_v27  ;;  %v4826_v27 = vld [vmem:[#allocation6 + $0x2b0] ss:$8 sps:$4 sm:$0xff]  }
 0x1e6   :  { %3811 = vmatpush1.bf16.msra.mxu1 %v4721_v35  ;;  %3771 = vmatprep.subr.bf16.mxu0 %v4726_v36  ;;  %v4843_v35 = vld [vmem:[#allocation6 + $0x364] ss:$8 sps:$4 sm:$0xff]  }
 0x1e7   :  { %3812 = vmatprep.subr.bf16.mxu1 %v4729_v37  ;;  %v4793_v37 = vld [vmem:[#allocation6 + $0x260] ss:$8 sps:$4 sm:$0xff]  }
 0x1e9   :  { %3772 = vmatpush1.bf16.msra.mxu0 %v4724_v38 }
 0x1ea   :  { %3813 = vmatpush1.bf16.msra.mxu1 %v4727_v39  ;;  %3773 = vmatprep.subr.bf16.mxu0 %v4732_v40  ;;  %v4798_v39 = vld [vmem:[#allocation6 + $0x254] ss:$8 sps:$4 sm:$0xff]   ;;  %v4841_v40 = vld [vmem:[#allocation6 + $0x360] ss:$8 sps:$4 sm:$0xff]  }
 0x1eb   :  { %3814 = vmatprep.subr.bf16.mxu1 %v4735_v41 }
 0x1ed   :  { %3774 = vmatpush1.bf16.msra.mxu0 %v4730_v19  ;;  %v4846_v19 = vld [vmem:[#allocation6 + $0x354] ss:$8 sps:$4 sm:$0xff]  }
 0x1ee   :  { %3815 = vmatpush1.bf16.msra.mxu1 %v4733_v58  ;;  %3775 = vmatprep.subr.bf16.mxu0 %v4738_v43 }
 0x1ef   :  { %3816 = vmatprep.subr.bf16.mxu1 %v4741_v44  ;;  %v4796_v44 = vld [vmem:[#allocation6 + $0x250] ss:$8 sps:$4 sm:$0xff]  }
 0x1f1   :  { %3776 = vmatpush1.bf16.msra.mxu0 %v4736_v45 }
 0x1f2   :  { %3817 = vmatpush1.bf16.msra.mxu1 %v4739_v46  ;;  %3777 = vmatprep.subr.bf16.mxu0 %v4744_v47  ;;  %v4801_v46 = vld [vmem:[#allocation6 + $0x244] ss:$8 sps:$4 sm:$0xff]   ;;  %v4844_v47 = vld [vmem:[#allocation6 + $0x350] ss:$8 sps:$4 sm:$0xff]  }
 0x1f3   :  { %3818 = vmatprep.subr.bf16.mxu1 %v4747_v50 }
 0x1f5   :  { %3778 = vmatpush2.bf16.msra.mxu0 %v4742_v56  ;;  %v4849_v56 = vld [vmem:[#allocation6 + $0x344] ss:$8 sps:$4 sm:$0xff]  }
 0x1f6   :  { %3819 = vmatpush2.bf16.msra.mxu1 %v4745_v57  ;;  %3779 = vmatprep.subr.bf16.mxu0 %v4750_v62  ;;  %v4799_v57 = vld [vmem:[#allocation6 + $0x240] ss:$8 sps:$4 sm:$0xff]   ;;  %v4804_v62 = vld [vmem:[#allocation6 + $0x234] ss:$8 sps:$4 sm:$0xff]  }
 0x1f7   :  { %3820 = vmatprep.subr.bf16.mxu1 %v4753_v63  ;;  %v4847_v63 = vld [vmem:[#allocation6 + $0x340] ss:$8 sps:$4 sm:$0xff]  }
 0x1f9   :  { %3780 = vmatpush2.bf16.msra.mxu0 %v4748_v0  ;;  %v4852_v0 = vld [vmem:[#allocation6 + $0x334] ss:$8 sps:$4 sm:$0xff]  }
 0x1fa   :  { %3821 = vmatpush2.bf16.msra.mxu1 %v4751_v21  ;;  %3781 = vmatprep.subr.bf16.mxu0 %v4756_v1  ;;  %v4802_v21 = vld [vmem:[#allocation6 + $0x230] ss:$8 sps:$4 sm:$0xff]   ;;  %v4807_v1 = vld [vmem:[#allocation6 + $0x224] ss:$8 sps:$4 sm:$0xff]  }
 0x1fb   :  { %3822 = vmatprep.subr.bf16.mxu1 %v4759_v2  ;;  %v4850_v2 = vld [vmem:[#allocation6 + $0x330] ss:$8 sps:$4 sm:$0xff]  }
 0x1fd   :  { %3782 = vmatpush2.bf16.msra.mxu0 %v4754_v16  ;;  %v4855_v16 = vld [vmem:[#allocation6 + $0x324] ss:$8 sps:$4 sm:$0xff]  }
 0x1fe   :  { %3823 = vmatpush2.bf16.msra.mxu1 %v4757_v3  ;;  %3783 = vmatprep.subr.bf16.mxu0 %v4762_v4  ;;  %v4805_v3 = vld [vmem:[#allocation6 + $0x220] ss:$8 sps:$4 sm:$0xff]   ;;  %v4810_v4 = vld [vmem:[#allocation6 + $0x214] ss:$8 sps:$4 sm:$0xff]  }
 0x1ff   :  { %3824 = vmatprep.subr.bf16.mxu1 %v4765_v5  ;;  %v4853_v5 = vld [vmem:[#allocation6 + $0x320] ss:$8 sps:$4 sm:$0xff]  }
 0x201   :  { %3784 = vmatpush2.bf16.msra.mxu0 %v4760_v7  ;;  %v4808_v7 = vld [vmem:[#allocation6 + $0x210] ss:$8 sps:$4 sm:$0xff]  }
 0x202   :  { %3825 = vmatpush2.bf16.msra.mxu1 %v4763_v8  ;;  %3785 = vmatprep.subr.bf16.mxu0 %v4768_v29  ;;  %v4813_v8 = vld [vmem:[#allocation6 + $0x204] ss:$8 sps:$4 sm:$0xff]   ;;  %v4856_v29 = vld [vmem:[#allocation6 + $0x310] ss:$8 sps:$4 sm:$0xff]  }
 0x203   :  { %3826 = vmatprep.subr.bf16.mxu1 %v4771_v52  ;;  %v4861_v52 = vld [vmem:[#allocation6 + $0x304] ss:$8 sps:$4 sm:$0xff]  }
 0x205   :  { %3786 = vmatpush2.bf16.msra.mxu0 %v4766_v55  ;;  %v4816_v55 = vld [vmem:[#allocation6 + $0x2f4] ss:$8 sps:$4 sm:$0xff]  }
 0x206   :  { %3827 = vmatpush2.bf16.msra.mxu1 %v4769_v12  ;;  %3787 = vmatprep.subr.bf16.mxu0 %v4774_v28  ;;  %v4859_v12 = vld [vmem:[#allocation6 + $0x300] ss:$8 sps:$4 sm:$0xff]   ;;  %v4864_v28 = vld [vmem:[#allocation6 + $0x3f4] ss:$8 sps:$4 sm:$0xff]  }
 0x207   :  { %3828 = vmatprep.subr.bf16.mxu1 %v4777_v13  ;;  %v4814_v13 = vld [vmem:[#allocation6 + $0x2f0] ss:$8 sps:$4 sm:$0xff]  }
 0x209   :  { %3788 = vmatpush2.bf16.msra.mxu0 %v4772_v15  ;;  %v4862_v15 = vld [vmem:[#allocation6 + $0x3f0] ss:$8 sps:$4 sm:$0xff]  }
 0x20a   :  { %3829 = vmatpush2.bf16.msra.mxu1 %v4775_v17  ;;  %3789 = vmatprep.subr.bf16.mxu0 %v4780_v18  ;;  %v4867_v17 = vld [vmem:[#allocation6 + $0x3e4] ss:$8 sps:$4 sm:$0xff]   ;;  %v4817_v18 = vld [vmem:[#allocation6 + $0x2e0] ss:$8 sps:$4 sm:$0xff]  }
 0x20b   :  { %3830 = vmatprep.subr.bf16.mxu1 %v4783_v22  ;;  %v4865_v22 = vld [vmem:[#allocation6 + $0x3e0] ss:$8 sps:$4 sm:$0xff]  }
 0x20d   :  { %3790 = vmatpush2.bf16.msra.mxu0 %v4778_v61  ;;  %v4870_v61 = vld [vmem:[#allocation6 + $0x3d4] ss:$8 sps:$4 sm:$0xff]  }
 0x20e   :  { %3831 = vmatpush2.bf16.msra.mxu1 %v4781_v23  ;;  %3791 = vmatprep.subr.bf16.mxu0 %v4786_v32  ;;  %v4820_v23 = vld [vmem:[#allocation6 + $0x2d0] ss:$8 sps:$4 sm:$0xff]   ;;  %v4825_v32 = vld [vmem:[#allocation6 + $0x2c4] ss:$8 sps:$4 sm:$0xff]  }
 0x20f   :  { %3832 = vmatprep.subr.bf16.mxu1 %v4789_v49  ;;  %v4873_v49 = vld [vmem:[#allocation6 + $0x3c4] ss:$8 sps:$4 sm:$0xff]  }
 0x211   :  { %3792 = vmatpush2.bf16.msra.mxu0 %v4784_v53  ;;  %v4823_v53 = vld [vmem:[#allocation6 + $0x2c0] ss:$8 sps:$4 sm:$0xff]  }
 0x212   :  { %3833 = vmatpush2.bf16.msra.mxu1 %v4787_v26  ;;  %3843 = vmatprep.subr.bf16.mxu0 %v4792_v10  ;;  %v4871_v26 = vld [vmem:[#allocation6 + $0x3c0] ss:$8 sps:$4 sm:$0xff]   ;;  %v4876_v10 = vld [vmem:[#allocation6 + $0x3b4] ss:$8 sps:$4 sm:$0xff]  }
 0x213   :  { %3884 = vmatprep.subr.bf16.mxu1 %v4840_v54  ;;  %v4831_v54 = vld [vmem:[#allocation6 + $0x2a4] ss:$8 sps:$4 sm:$0xff]  }
 0x214   :  { %v5210_v36 = vpop.f32.mrf.mxu0  ;;  %3794 = vmatmul.mubr.bf16.vlgmr.msra.gmra.mxu0 %v2973_v31  ;;  %v4879_v31 = vld [vmem:[#allocation6 + $0x3a4] ss:$8 sps:$4 sm:$0xff]  }
 0x215   :  { %v5212_v48 = vpop.f32.mrf.mxu1  ;;  %3835 = vmatmul.mubr.bf16.vlgmr.msra.gmra.mxu1 %v2975_v34  ;;  %3844 = vmatpush1.bf16.msra.mxu0 %v4790_v30  ;;  %v4874_v30 = vld [vmem:[#allocation6 + $0x3b0] ss:$8 sps:$4 sm:$0xff]   ;;  %v4877_v34 = vld [vmem:[#allocation6 + $0x3a0] ss:$8 sps:$4 sm:$0xff]  }
 0x216   :  { %v5214_v38 = vpop.f32.mrf.mxu0  ;;  %3845 = vmatprep.subr.bf16.mxu0 %v4795_v33  ;;  %3885 = vmatpush1.bf16.msra.mxu1 %v4838_v59  ;;  %v4829_v33 = vld [vmem:[#allocation6 + $0x2a0] ss:$8 sps:$4 sm:$0xff]   ;;  %v4834_v59 = vld [vmem:[#allocation6 + $0x294] ss:$8 sps:$4 sm:$0xff]  }
 0x217   :  { %v5216_v41 = vpop.f32.mrf.mxu1  ;;  %3886 = vmatprep.subr.bf16.mxu1 %v4843_v35  ;;  %v510_v35 = vsub.s32 4, %v5158_v42 }
 0x218   :  { %v2757_v58 = vpop.f32.mrf.mxu0 }
 0x219   :  { %v2798_v43 = vpop.f32.mrf.mxu1  ;;  %3846 = vmatpush1.bf16.msra.mxu0 %v4793_v37  ;;  %v4882_v37 = vld [vmem:[#allocation6 + $0x394] ss:$8 sps:$4 sm:$0xff]   ;;  %v4880_v58 = vld [vmem:[#allocation6 + $0x390] ss:$8 sps:$4 sm:$0xff]  }
 0x21a   :  { %v2758_v45 = vpop.f32.mrf.mxu0  ;;  %3847 = vmatprep.subr.bf16.mxu0 %v4798_v39  ;;  %3887 = vmatpush1.bf16.msra.mxu1 %v4841_v40  ;;  %v514_v39 = vsub.s32 5, %v5158_v42  ;;  %v4832_v40 = vld [vmem:[#allocation6 + $0x290] ss:$8 sps:$4 sm:$0xff]   ;;  %v511_v43 = vrot.slane %v5203_v9, %v510_v35 }
 0x21b   :  { %v2799_v50 = vpop.f32.mrf.mxu1  ;;  %3888 = vmatprep.subr.bf16.mxu1 %v4846_v19  ;;  %v4837_v19 = vld [vmem:[#allocation6 + $0x284] ss:$8 sps:$4 sm:$0xff]   ;;  %v4896_v35 = vld [vmem:[#allocation9 + $0x50] sm:$0xff]  }
 0x21c   :  { %v515_v45 = vrot.slane %v5203_v9, %v514_v39  ;;  %v2754_v50 = vadd.f32 %v5210_v36, %v511_v43  ;;  %v3109_v39 = vld [vmem:[#allocation7] sm:$0x3] }
 0x21d   :  { %3848 = vmatpush1.bf16.msra.mxu0 %v4796_v44  ;;  %v4885_v44 = vld [vmem:[#allocation6 + $0x384] ss:$8 sps:$4 sm:$0xff]  }
 0x21e   :  { %3849 = vmatprep.subr.bf16.mxu0 %v4801_v46  ;;  %3889 = vmatpush1.bf16.msra.mxu1 %v4844_v47  ;;  %v4835_v46 = vld [vmem:[#allocation6 + $0x280] ss:$8 sps:$4 sm:$0xff]  }
 0x21f   :  { %3890 = vmatprep.subr.bf16.mxu1 %v4849_v56  ;;  %v4883_v47 = vld [vmem:[#allocation6 + $0x380] ss:$8 sps:$4 sm:$0xff]   ;;  %v2756_v56 = vadd.f32 %v5214_v38, %v515_v45 }
 0x221   :  { %3850 = vmatpush1.bf16.msra.mxu0 %v4799_v57  ;;  %v2795_v57 = vadd.f32 %v5212_v48, %v2754_v50  ;;  %v518_v48 = vsub.s32 6, %v5158_v42 }
 0x222   :  { %3851 = vmatprep.subr.bf16.mxu0 %v4804_v62  ;;  %3891 = vmatpush1.bf16.msra.mxu1 %v4847_v63  ;;  %v2797_v63 = vadd.f32 %v5216_v41, %v2756_v56 }
 0x223   :  { %3892 = vmatprep.subr.bf16.mxu1 %v4852_v0  ;;  %v519_v41 = vrot.slane %v5203_v9, %v518_v48 }
 0x225   :  { %3852 = vmatpush1.bf16.msra.mxu0 %v4802_v21 }
 0x226   :  { %3853 = vmatprep.subr.bf16.mxu0 %v4807_v1  ;;  %3893 = vmatpush1.bf16.msra.mxu1 %v4850_v2 }
 0x227   :  { %3894 = vmatprep.subr.bf16.mxu1 %v4855_v16 }
 0x229   :  { %3854 = vmatpush1.bf16.msra.mxu0 %v4805_v3 }
 0x22a   :  { %3855 = vmatprep.subr.bf16.mxu0 %v4810_v4  ;;  %3895 = vmatpush1.bf16.msra.mxu1 %v4853_v5 }
 0x22b   :  { %3896 = vmatprep.subr.bf16.mxu1 %v4858_v6 }
 0x22d   :  { %3856 = vmatpush1.bf16.msra.mxu0 %v4808_v7 }
 0x22e   :  { %3857 = vmatprep.subr.bf16.mxu0 %v4813_v8  ;;  %3897 = vmatpush1.bf16.msra.mxu1 %v4856_v29  ;;  %v522_v29 = vsub.s32 7, %v5158_v42 }
 0x22f   :  { %3898 = vmatprep.subr.bf16.mxu1 %v4861_v52 }
 0x230   :  { %v523_v52 = vrot.slane %v5203_v9, %v522_v29  ;;  %v4886_v9 = vld [vmem:[#allocation9 + $0x78] sm:$0xff]  }
 0x231   :  { %3858 = vmatpush1.bf16.msra.mxu0 %v4811_v11 }
 0x232   :  { %3859 = vmatprep.subr.bf16.mxu0 %v4816_v55  ;;  %3899 = vmatpush1.bf16.msra.mxu1 %v4859_v12 }
 0x233   :  { %3900 = vmatprep.subr.bf16.mxu1 %v4864_v28 }
 0x235   :  { %3860 = vmatpush2.bf16.msra.mxu0 %v4814_v13 }
 0x236   :  { %3861 = vmatprep.subr.bf16.mxu0 %v4819_v14  ;;  %3901 = vmatpush2.bf16.msra.mxu1 %v4862_v15 }
 0x237   :  { %3902 = vmatprep.subr.bf16.mxu1 %v4867_v17 }
 0x239   :  { %3862 = vmatpush2.bf16.msra.mxu0 %v4817_v18 }
 0x23a   :  { %3863 = vmatprep.subr.bf16.mxu0 %v4822_v20  ;;  %3903 = vmatpush2.bf16.msra.mxu1 %v4865_v22 }
 0x23b   :  { %3904 = vmatprep.subr.bf16.mxu1 %v4870_v61 }
 0x23d   :  { %3864 = vmatpush2.bf16.msra.mxu0 %v4820_v23 }
 0x23e   :  { %3865 = vmatprep.subr.bf16.mxu0 %v4825_v32  ;;  %3905 = vmatpush2.bf16.msra.mxu1 %v4868_v24 }
 0x23f   :  { %3906 = vmatprep.subr.bf16.mxu1 %v4873_v49 }
 0x241   :  { %3866 = vmatpush2.bf16.msra.mxu0 %v4823_v53 }
 0x242   :  { %3867 = vmatprep.subr.bf16.mxu0 %v4828_v25  ;;  %3907 = vmatpush2.bf16.msra.mxu1 %v4871_v26  ;;  %v4887_v26 = vld [vmem:[#allocation9 + $0x38] sm:$0xff]  }
 0x243   :  { %3908 = vmatprep.subr.bf16.mxu1 %v4876_v10  ;;  %v4888_v10 = vld [vmem:[#allocation9 + $0x70] sm:$0xff]  }
 0x245   :  { %3868 = vmatpush2.bf16.msra.mxu0 %v4826_v27  ;;  %v4889_v27 = vld [vmem:[#allocation9 + $0x30] sm:$0xff]  }
 0x246   :  { %3869 = vmatprep.subr.bf16.mxu0 %v4831_v54  ;;  %3909 = vmatpush2.bf16.msra.mxu1 %v4874_v30  ;;  %v4890_v54 = vld [vmem:[#allocation9 + $0x68] sm:$0xff]  }
 0x247   :  { %3910 = vmatprep.subr.bf16.mxu1 %v4879_v31  ;;  %v4891_v30 = vld [vmem:[#allocation9 + $0x28] sm:$0xff]   ;;  %v4892_v31 = vld [vmem:[#allocation9 + $0x60] sm:$0xff]  }
 0x249   :  { %3870 = vmatpush2.bf16.msra.mxu0 %v4829_v33  ;;  %v4893_v33 = vld [vmem:[#allocation9 + $0x20] sm:$0xff]  }
 0x24a   :  { %3871 = vmatprep.subr.bf16.mxu0 %v4834_v59  ;;  %3911 = vmatpush2.bf16.msra.mxu1 %v4877_v34  ;;  %v4894_v59 = vld [vmem:[#allocation9 + $0x58] sm:$0xff]  }
 0x24b   :  { %3912 = vmatprep.subr.bf16.mxu1 %v4882_v37  ;;  %v4895_v34 = vld [vmem:[#allocation9 + $0x18] sm:$0xff]   ;;  %v4897_v37 = vld [vmem:[#allocation9 + $0x10] sm:$0xff]  }
 0x24d   :  { %3872 = vmatpush2.bf16.msra.mxu0 %v4832_v40  ;;  %v3114_v40 = vrot.slane %v3109_v39, %v494_v51  ;;  %v4900_v51 = vld [vmem:[#allocation9 + $0x40] sm:$0xff]  }
 0x24e   :  { %3873 = vmatprep.subr.bf16.mxu0 %v4837_v19  ;;  %3913 = vmatpush2.bf16.msra.mxu1 %v4880_v58  ;;  %v3118_v19 = vrot.slane %v3109_v39, %v498_v60 }
 0x24f   :  { %3914 = vmatprep.subr.bf16.mxu1 %v4885_v44 }
 0x251   :  { %3874 = vmatpush2.bf16.msra.mxu0 %v4835_v46 }
 0x252   :  { %3915 = vmatpush2.bf16.msra.mxu1 %v4883_v47  ;;  %4654 = vmatprep.subr.bf16.mxu0 %v4886_v9 }
 0x254   :  { %v2835_v62 = vpop.f32.mrf.mxu0 }
 0x255   :  { %v2836_v0 = vadd.f32 %v2835_v62, %v2795_v57  ;;  %v2876_v21 = vpop.f32.mrf.mxu1 }
 0x256   :  { %v2837_v1 = vpop.f32.mrf.mxu0  ;;  %v2877_v11 = vadd.f32 %v2876_v21, %v519_v41  ;;  %v4898_v21 = vld [vmem:[#allocation9 + $0x48] sm:$0xff]  }
 0x257   :  { %v2838_v2 = vadd.f32 %v2837_v1, %v2797_v63  ;;  %v2878_v16 = vpop.f32.mrf.mxu1  ;;  %v2969_v3 = vmax.f32 %v2836_v0, 0.0  ;;  %v4899_v1 = vld [vmem:[#allocation9 + $0x8] sm:$0xff]  }
 0x258   :  { %v2839_v4 = vpop.f32.mrf.mxu0  ;;  %v2879_v12 = vadd.f32 %v2878_v16, %v523_v52 }
 0x259   :  { %v2970_v5 = vmax.f32 %v2838_v2, 0.0  ;;  %v2880_v6 = vpop.f32.mrf.mxu1  ;;  %v2977_v38 = vpack.c.bf16 %v2969_v3, %v2969_v3  ;;  %v4901_v2 = vld [vmem:[#allocation9] sm:$0xff]  }
 0x25a   :  { %v2840_v36 = vpop.f32.mrf.mxu0 }
 0x25b   :  { %v2978_v7 = vpack.c.bf16 %v2970_v5, %v2970_v5  ;;  %v2881_v8 = vpop.f32.mrf.mxu1 }
 0x25d   :  { %3875 = vmatprep.mubr.bf16.mxu0 %v2978_v7 }
 0x25e   :  { %3876 = vmatmul.mubr.bf16.vlgmr.msra.gmra.mxu0 %v2977_v38 }
 0x25f   :  { %4655 = vmatpush3.bf16.msra.mxu0 %v4887_v26 }
 0x260   :  { %4656 = vmatprep.subr.bf16.mxu0 %v4888_v10 }
 0x263   :  { %4657 = vmatpush3.bf16.msra.mxu0 %v4889_v27 }
 0x264   :  { %4658 = vmatprep.subr.bf16.mxu0 %v4890_v54 }
 0x267   :  { %4659 = vmatpush3.bf16.msra.mxu0 %v4891_v30 }
 0x268   :  { %4660 = vmatprep.subr.bf16.mxu0 %v4892_v31 }
 0x26b   :  { %4661 = vmatpush3.bf16.msra.mxu0 %v4893_v33 }
 0x26c   :  { %4662 = vmatprep.subr.bf16.mxu0 %v4894_v59 }
 0x26f   :  { %4663 = vmatpush3.bf16.msra.mxu0 %v4895_v34 }
 0x270   :  { %4664 = vmatprep.subr.bf16.mxu0 %v4896_v35 }
 0x273   :  { %4665 = vmatpush3.bf16.msra.mxu0 %v4897_v37 }
 0x274   :  { %4666 = vmatprep.subr.bf16.mxu0 %v4898_v21 }
 0x277   :  { %4667 = vmatpush3.bf16.msra.mxu0 %v4899_v1 }
 0x278   :  { %4668 = vmatprep.subr.bf16.mxu0 %v4900_v51 }
 0x27b   :  { %4669 = vmatpush3.bf16.msra.mxu0 %v4901_v2 }
 0x294   :  { %v2917_v55 = vpop.f32.mrf.mxu0 }
 0x295   :  { %v2918_v28 = vadd.f32 %v2917_v55, %v2877_v11  ;;  %v2958_v13 = vpop.f32.mrf.mxu1 }
 0x296   :  { %v2919_v14 = vpop.f32.mrf.mxu0 }
 0x297   :  { %v2959_v15 = vadd.f32 %v2958_v13, %v2918_v28  ;;  %v2920_v17 = vadd.f32 %v2919_v14, %v2879_v12  ;;  %v2960_v18 = vpop.f32.mrf.mxu1  ;;  %v4637_v12 = vld [vmem:[#allocation10] ss:$0 sm:$0xff] }
 0x298   :  { %v2921_v20 = vpop.f32.mrf.mxu0 }
 0x299   :  { %v2961_v22 = vadd.f32 %v2960_v18, %v2920_v17  ;;  %v2962_v61 = vpop.f32.mrf.mxu1  ;;  %v2971_v23 = vmax.f32 %v2959_v15, 0.0 }
 0x29a   :  { %v2922_v32 = vpop.f32.mrf.mxu0 }
 0x29b   :  { %v2972_v24 = vmax.f32 %v2961_v22, 0.0  ;;  %v2963_v49 = vpop.f32.mrf.mxu1  ;;  %v2979_v25 = vpack.c.bf16 %v2971_v23, %v2971_v23 }
 0x29d   :  { %v2980_v53 = vpack.c.bf16 %v2972_v24, %v2972_v24 }
 0x29f   :  { %3916 = vmatprep.mubr.bf16.mxu1 %v2980_v53 }
 0x2a0   :  { %3917 = vmatmul.mubr.bf16.vlgmr.msra.gmra.mxu1 %v2979_v25 }
 0x2d4   :  { %v3795_v58 = vpop.f32.mrf.mxu0 }
 0x2d5   :  { %v3796_v43 = vadd.f32 %v3795_v58, %v3114_v40  ;;  %v3836_v44 = vpop.f32.mrf.mxu1 }
 0x2d6   :  { %v3797_v45 = vpop.f32.mrf.mxu0 }
 0x2d7   :  { %v3837_v46 = vadd.f32 %v3836_v44, %v3796_v43  ;;  %v3798_v47 = vadd.f32 %v3797_v45, %v3118_v19  ;;  %v3838_v50 = vpop.f32.mrf.mxu1 }
 0x2d8   :  { %v3799_v56 = vpop.f32.mrf.mxu0 }
 0x2d9   :  { %v3839_v57 = vadd.f32 %v3838_v50, %v3798_v47  ;;  %v3840_v62 = vpop.f32.mrf.mxu1 }
 0x2da   :  { %v3800_v63 = vpop.f32.mrf.mxu0 }
 0x2db   :  { %v3841_v0 = vpop.f32.mrf.mxu1 }
 0x31e   :  { %v3877_v42 = vpop.f32.mrf.mxu0 }
 0x31f   :  { %v3878_v60 = vadd.f32 %v3877_v42, %v3837_v46 }
 0x320   :  { %v3879_v16 = vpop.f32.mrf.mxu0 }
 0x321   :  { %v3880_v3 = vadd.f32 %v3879_v16, %v3839_v57 }
 0x322   :  { %v3881_v4 = vpop.f32.mrf.mxu0 }
 0x324   :  { %v3882_v5 = vpop.f32.mrf.mxu0 }
 0x360   :  { %v3918_v6 = vpop.f32.mrf.mxu1 }
 0x361   :  { %v3919_v36 = vadd.f32 %v3918_v6, %v3878_v60 }
 0x362   :  { %v3920_v7 = vpop.f32.mrf.mxu1 }
 0x363   :  { %v3921_v8 = vadd.f32 %v3920_v7, %v3880_v3  ;;  %v3925_v38 = vmax.f32 %v3919_v36, 0.0 }
 0x364   :  { %v3922_v48 = vpop.f32.mrf.mxu1 }
 0x365   :  { %v3926_v29 = vmax.f32 %v3921_v8, 0.0  ;;  %v3927_v11 = vpack.c.bf16 %v3925_v38, %v3925_v38 }
 0x366   :  { %v3923_v41 = vpop.f32.mrf.mxu1 }
 0x367   :  { %v3928_v52 = vpack.c.bf16 %v3926_v29, %v3926_v29 }
 0x369   :  { %4096 = vmatprep.mubr.bf16.mxu0 %v3928_v52 }
 0x36a   :  { %4097 = vmatmul.mubr.bf16.vlgmr.msra.gmra.mxu0 %v3927_v11 }
 0x42a   :  { %v4670_v55 = vpop.f32.mrf.mxu0 }
 0x42c   :  { %v4671_v28 = vpop.f32.mrf.mxu0 }
 0x42d   :  { %v4672_v13 = vadd.f32 %v4671_v28, %v4670_v55 }
 0x42e   :  { %v4673_v14 = vpop.f32.mrf.mxu0 }
 0x42f   :  { %v4099_v15 = vadd.f32 %v4672_v13, %v4637_v12 }
 0x430   :  { %v4674_v17 = vpop.f32.mrf.mxu0 }
 0x431   :  { %v4104_v18 = vsub.f32 0.0, %v4099_v15 }
 0x433   :  { %v4105_v20 = vmul.f32 1.442695, %v4104_v18 }
 0x435   :  { %4902 = vpow2.f32 %v4105_v20 }
 0x442   :  { %v4903_v22 = vpop.eup %4902 }
 0x443   :  { %v4107_v61 = vadd.f32 1.0, %v4903_v22 }
 0x445   :  { %4904 = vrcp.f32 %v4107_v61 }
 0x452   :  { %v4905_v23 = vpop.eup %4904 }
 0x453   :  { %4110 = vst [vmem:[%s5244_s7] sm:$0xff] %v4905_v23 }
 0x454   :  { %4115 = vsyncpa [#allocation3], 1 }
 0x455   :  { %4116 = vsyncpa [#allocation5], 1 }
 0x456   :  { %4117 = vsyncpa [#allocation8], 1 }
 0x457   :  { %4118 = vsyncpa [#allocation11], 1 }

</bundles_post_ra>
